<compile_context>
chip_gen: v6e
topology: v6e:2x2x1
jax: 0.10.0
libtpu: 0.0.40
codegen_flags: <defaults>
</compile_context>

<pallas_src>
import math
import numpy as np
import jax
import jax.numpy as jnp
from jax import lax
from jax.experimental import pallas as pl
from jax.experimental.pallas import tpu as pltpu

DIM = 3          # point dimension
POSE_DIM = 6     # pose dimension
Z_DIM = 128
C_DIM = 128
HIDDEN = 128     # hidden_size == d_model
HEADS = 16
D_K = HIDDEN // HEADS   # 8
N_W = 12         # 10 resnet weights + Wv + Wo
N_B = 12         # 10 resnet biases + bv + bo


def _make_kernel(Bb, T):
    """Kernel for one batch block of Bb elements (grid = (num_batch_blocks,)).

    Weight stack (w_ref, bf16):  0..9 block{0..4}.fc_0 / fc_1, 10 Wv, 11 Wo
    Bias stack   (b_ref, f32):   0..9 resnet biases,           10 bv, 11 bo
    wqk_ref: fused [Wq/sqrt(d_k) | Wk]  (128, 256) bf16;  bqk_ref = [0 | bk]
    """
    f32, bf16 = jnp.float32, jnp.bfloat16
    R = Bb * T
    HT = HEADS * T

    def kernel(net0_ref, pose_ref, w_ref, wqk_ref, b_ref, bqk_ref, mask_ref,
               wout_ref, bout_ref, out_ref, qk_scr, v_scr, ctx_scr):
        def mm(x, wi):
            # bf16 operands, f32 accumulation on the MXU.
            return jnp.dot(x.astype(bf16), w_ref[wi], preferred_element_type=f32)

        # ---- 5x ResnetBlockFC on the whole (R, 128) row block ----------------
        net = net0_ref[...]                                   # f32 (R, HIDDEN)
        for i in range(5):
            h = mm(jnp.maximum(net, 0.0), 2 * i) + b_ref[2 * i]
            dx = mm(jnp.maximum(h, 0.0), 2 * i + 1) + b_ref[2 * i + 1]
            net = net + dx

        # ---- fused Q|K projection (single (R,128)@(128,256) matmul) + V ------
        qk_scr[...] = (jnp.dot(pose_ref[...], wqk_ref[...],
                               preferred_element_type=f32) + bqk_ref[...])
        v_scr[...] = mm(net, 10) + b_ref[10]

        # ---- per-batch-element multi-head attention (lane-major scores) ------
        # TODO(synk): nn.Dropout(p=0.8) on attention weights is eval-mode identity.
        @pl.loop(0, Bb)
        def _(b):
            r0 = pl.multiple_of(b * T, T)
            qk_b = qk_scr[pl.ds(r0, T), :]                    # (T, 256) f32
            q_b = qk_b[:, :HIDDEN].astype(bf16)               # (T, 128) bf16
            k_b = qk_b[:, HIDDEN:]                            # (T, 128) f32
            v_b = v_scr[pl.ds(r0, T), :]                      # (T, 128) f32

            # Head-masked stacks: row h*T + j holds k/v row j restricted to the
            # lanes of head h.  Mask multiply in f32 (v5e has no bf16 VALU),
            # cast to bf16 only as MXU operands.
            mask = mask_ref[...]                              # (HT, 128) f32
            kstack = (jnp.concatenate([k_b] * HEADS, axis=0) * mask).astype(bf16)
            vstack = (jnp.concatenate([v_b] * HEADS, axis=0) * mask).astype(bf16)

            # Scores (T, HT): column h*T + j = head h, key j.  Full-K, full-N
            # MXU matmul (q is not replicated; the mask on K selects the head).
            s = lax.dot_general(q_b, kstack, (((1,), (1,)), ((), ())),
                                preferred_element_type=f32)

            # Per-head softmax over aligned T-lane segments: XLU roll butterfly
            # (every lane ends up holding its segment's reduction).
            lane_in_seg = lax.broadcasted_iota(jnp.int32, (T, HT), 1) % T

            def seg_reduce(x, op):
                r = x
                k = 1
                while k < T:               # within-segment rotate by k, then op
                    fwd = pltpu.roll(r, shift=HT - k, axis=1)   # r[(j+k) % HT]
                    bwd = pltpu.roll(r, shift=T - k, axis=1)    # r[(j+k-T) % HT]
                    r = op(r, jnp.where(lane_in_seg + k < T, fwd, bwd))
                    k *= 2
                return r

            m = seg_reduce(s, jnp.maximum)
            e = jnp.exp(s - m)
            denom = seg_reduce(e, jnp.add)
            a = e * pl.reciprocal(denom, approx=True)

            # ctx (T, 128): one full-K/full-N matmul; the V mask routes each
            # head's attention weights to that head's output lanes.
            ctx_scr[pl.ds(r0, T), :] = jnp.dot(a.astype(bf16), vstack,
                                               preferred_element_type=f32)

        # ---- w_o + relu + fc_out over the whole row block ---------------------
        pose_net = mm(ctx_scr[...], 11) + b_ref[11]
        act = jnp.maximum(pose_net, 0.0)
        # Lane-dense epilogue: fc_out reduction as an MXU matvec -> (1, R).
        out_row = lax.dot_general(wout_ref[...], act.astype(bf16),
                                  (((1,), (1,)), ((), ())),
                                  preferred_element_type=f32)
        out_ref[...] = (out_row + bout_ref[...]).astype(out_ref.dtype)

    return kernel


def pose_attention_decoder(p, z, pose, c, params, *, target_rows=1024):
    B, T, _ = p.shape
    # Lane-major attention layout assumes T is a power of two >= 8 (T*HEADS
    # score lanes per query row).
    # TODO(synk): large T needs a different attention tiling (T tiled over the grid).
    assert T >= 8 and (T & (T - 1)) == 0, "T must be a power of two >= 8"
    f32, bf16 = jnp.float32, jnp.bfloat16

    # Tiny input projections (K = 3/6/128) stay in XLA; the kernel only sees
    # dense (rows, 128) activations (no zero-padded 3/6-wide inputs in HBM).
    net0 = (p.astype(f32) @ params["Wp"] + params["bp"]
            + (z.astype(f32) @ params["Wz"] + params["bz"])[:, None, :]
            + (c.astype(f32) @ params["Wc"] + params["bc"])[:, None, :])
    pose_h = pose.astype(f32) @ params["Wpd"] + params["bpd"]

    # Resident weight / bias stacks.
    w_list, b_list = [], []
    for i in range(5):
        w_list += [params[f"blk{i}_W0"], params[f"blk{i}_W1"]]
        b_list += [params[f"blk{i}_b0"], params[f"blk{i}_b1"]]
    w_list += [params["Wv"], params["Wo"]]
    b_list += [params["bv"], params["bo"]]
    w_stack = jnp.stack(w_list).astype(bf16)                       # (12,128,128)
    b_stack = jnp.stack(b_list)[:, None, :].astype(f32)            # (12,1,128)
    wqk = jnp.concatenate([params["Wq"] / math.sqrt(D_K), params["Wk"]],
                          axis=1).astype(bf16)                     # (128,256)
    bqk = jnp.concatenate([jnp.zeros((HIDDEN,), f32),
                           params["bk"].astype(f32)])[None, :]     # (1,256)
    wout_row = params["Wout"].reshape(1, HIDDEN).astype(bf16)      # (1,128)
    bout = params["bout"].reshape(1, 1).astype(f32)                # (1,1)

    # Head mask: row r (= h*T + j) keeps only the lanes of head h = r // T.
    rows = np.arange(HEADS * T)[:, None]
    lanes = np.arange(HIDDEN)[None, :]
    head_mask = jnp.asarray(((lanes // D_K) == (rows // T)).astype(np.float32))

    # Batch blocking: ~target_rows rows per grid step; keep NB >= 2 whenever
    # B >= 2 so v7x's two TensorCores both get work (negligible cost elsewhere).
    cdiv = lambda a, b: -(-a // b)
    Bb = max(1, min(B, cdiv(target_rows, T)))
    if B >= 2:
        Bb = min(Bb, cdiv(B, 2))
    NB = cdiv(B, Bb)
    B_pad = NB * Bb
    R = Bb * T

    net0_flat = net0.reshape(B * T, HIDDEN)
    pose_flat = pose_h.reshape(B * T, HIDDEN).astype(bf16)   # only an MXU operand
    if B_pad != B:
        pad = ((0, (B_pad - B) * T), (0, 0))
        net0_flat = jnp.pad(net0_flat, pad)
        pose_flat = jnp.pad(pose_flat, pad)

    out = pl.pallas_call(
        _make_kernel(Bb, T),
        out_shape=jax.ShapeDtypeStruct((NB, 1, R), f32),
        grid=(NB,),
        in_specs=[
            pl.BlockSpec((R, HIDDEN), lambda i: (i, 0)),               # net0 (f32)
            pl.BlockSpec((R, HIDDEN), lambda i: (i, 0)),               # pose (bf16)
            pl.BlockSpec((N_W, HIDDEN, HIDDEN), lambda i: (0, 0, 0)),  # weights (resident)
            pl.BlockSpec((HIDDEN, 2 * HIDDEN), lambda i: (0, 0)),      # fused Wq|Wk
            pl.BlockSpec((N_B, 1, HIDDEN), lambda i: (0, 0, 0)),       # biases (resident)
            pl.BlockSpec((1, 2 * HIDDEN), lambda i: (0, 0)),           # [0 | bk]
            pl.BlockSpec((HEADS * T, HIDDEN), lambda i: (0, 0)),       # head mask
            pl.BlockSpec((1, HIDDEN), lambda i: (0, 0)),               # fc_out weight row
            pl.BlockSpec((1, 1), lambda i: (0, 0)),                    # fc_out bias
        ],
        out_specs=pl.BlockSpec((None, 1, R), lambda i: (i, 0, 0)),     # lane-dense row
        scratch_shapes=[
            pltpu.VMEM((R, 2 * HIDDEN), f32),   # fused q|k (k bias included)
            pltpu.VMEM((R, HIDDEN), f32),       # v
            pltpu.VMEM((R, HIDDEN), f32),       # ctx (attention output)
        ],
        compiler_params=pltpu.CompilerParams(
            dimension_semantics=("parallel",),
            vmem_limit_bytes=32 * 1024 * 1024),
    )(net0_flat, pose_flat, w_stack, wqk, b_stack, bqk, head_mask, wout_row, bout)

    return out.reshape(B_pad, T)[:B]


def init_params(key):
    names_shapes = [
        ("Wp", (DIM, HIDDEN)), ("bp", (HIDDEN,)),
        ("Wz", (Z_DIM, HIDDEN)), ("bz", (HIDDEN,)),
        ("Wc", (C_DIM, HIDDEN)), ("bc", (HIDDEN,)),
        ("Wpd", (POSE_DIM, HIDDEN)), ("bpd", (HIDDEN,)),
    ]
    for i in range(5):
        names_shapes += [
            (f"blk{i}_W0", (HIDDEN, HIDDEN)), (f"blk{i}_b0", (HIDDEN,)),
            (f"blk{i}_W1", (HIDDEN, HIDDEN)), (f"blk{i}_b1", (HIDDEN,)),
        ]
    names_shapes += [
        ("Wq", (HIDDEN, HIDDEN)),
        ("Wk", (HIDDEN, HIDDEN)), ("bk", (HIDDEN,)),
        ("Wv", (HIDDEN, HIDDEN)), ("bv", (HIDDEN,)),
        ("Wo", (HIDDEN, HIDDEN)), ("bo", (HIDDEN,)),
        ("Wout", (HIDDEN, 1)), ("bout", (1,)),
    ]
    keys = jax.random.split(key, len(names_shapes))
    return {name: 0.05 * jax.random.normal(k, shape, dtype=jnp.float32)
            for k, (name, shape) in zip(keys, names_shapes)}


def reference_forward(p, z, pose, c, params):
    """Plain-JAX mirror of the PyTorch forward using the same bf16-operand /
    f32-accumulate matmul strategy as the kernel (for verification)."""
    f32, bf16 = jnp.float32, jnp.bfloat16

    def mm(x, w):
        return jnp.dot(x.astype(bf16), w.astype(bf16), preferred_element_type=f32)

    net = (p @ params["Wp"] + params["bp"]
           + (z @ params["Wz"] + params["bz"])[:, None, :]
           + (c @ params["Wc"] + params["bc"])[:, None, :])
    pose_h = pose @ params["Wpd"] + params["bpd"]
    for i in range(5):
        h = mm(jax.nn.relu(net), params[f"blk{i}_W0"]) + params[f"blk{i}_b0"]
        dx = mm(jax.nn.relu(h), params[f"blk{i}_W1"]) + params[f"blk{i}_b1"]
        net = net + dx
    q_ = mm(pose_h, params["Wq"] / math.sqrt(D_K))
    k_ = mm(pose_h, params["Wk"]) + params["bk"]
    v_ = mm(net, params["Wv"]) + params["bv"]
    B, S, _ = q_.shape
    qc = q_.reshape(B, S, HEADS, D_K).transpose(0, 2, 1, 3)
    kc = k_.reshape(B, S, HEADS, D_K).transpose(0, 2, 1, 3)
    vc = v_.reshape(B, S, HEADS, D_K).transpose(0, 2, 1, 3)
    s = jnp.einsum("bhqd,bhkd->bhqk", qc.astype(bf16), kc.astype(bf16),
                   preferred_element_type=f32)          # scale already in Wq
    a = jax.nn.softmax(s, axis=-1)
    x = jnp.einsum("bhqk,bhkd->bhqd", a.astype(bf16), vc.astype(bf16),
                   preferred_element_type=f32)
    x = x.transpose(0, 2, 1, 3).reshape(B, S, HEADS * D_K)
    pose_net = mm(x, params["Wo"]) + params["bo"]
    out = mm(jax.nn.relu(pose_net), params["Wout"])[..., 0] + params["bout"][0]
    return out


if __name__ == "__main__":
    key = jax.random.PRNGKey(0)
    kp, kz, kpose, kc, kparams = jax.random.split(key, 5)
    params = init_params(kparams)

    # (B=2, T=8): NB=2 grid blocks;  (B=3, T=8): batch padding + 2-iteration
    # attention loop inside one block.
    for B, T in ((2, 8), (3, 8)):
        p = jax.random.normal(kp, (B, T, DIM), dtype=jnp.float32)
        z = jax.random.normal(kz, (B, Z_DIM), dtype=jnp.float32)
        pose = jax.random.normal(kpose, (B, T, POSE_DIM), dtype=jnp.float32)
        c = jax.random.normal(kc, (B, C_DIM), dtype=jnp.float32)

        out = jax.block_until_ready(pose_attention_decoder(p, z, pose, c, params))
        ref = reference_forward(p, z, pose, c, params)
        # bf16-operand pipeline (+ approx softmax reciprocal) -> 1e-2 tolerance.
        np.testing.assert_allclose(np.asarray(out), np.asarray(ref),
                                   rtol=1e-2, atol=1e-2)
    print("KERNEL_OK")
</pallas_src>

<mosaic_0001>
module attributes {stable_mosaic.version = 11 : i64} {
  func.func @kernel(%arg0: i32, %arg1: memref<8x128xf32, #tpu.memory_space<vmem>>, %arg2: memref<8x128xbf16, #tpu.memory_space<vmem>>, %arg3: memref<12x128x128xbf16, #tpu.memory_space<vmem>>, %arg4: memref<128x256xbf16, #tpu.memory_space<vmem>>, %arg5: memref<12x1x128xf32, #tpu.memory_space<vmem>>, %arg6: memref<1x256xf32, #tpu.memory_space<vmem>>, %arg7: memref<128x128xf32, #tpu.memory_space<vmem>>, %arg8: memref<1x128xbf16, #tpu.memory_space<vmem>>, %arg9: memref<1x1xf32, #tpu.memory_space<vmem>>, %arg10: memref<1x1x8xf32, #tpu.memory_space<vmem>>, %arg11: memref<8x256xf32, #tpu.memory_space<vmem>>, %arg12: memref<8x128xf32, #tpu.memory_space<vmem>>, %arg13: memref<8x128xf32, #tpu.memory_space<vmem>>) attributes {dimension_semantics = [#tpu.dimension_semantics<parallel>], iteration_bounds = array<i64: 2>, scalar_prefetch = 0 : i64, scratch_operands = 3 : i64, tpu.core_type = #tpu.core_type<tc>, window_params = [{transform_indices = @transform_0, window_bounds = array<i64: 8, 128>}, {transform_indices = @transform_1, window_bounds = array<i64: 8, 128>}, {pipeline_mode = #tpu.pipeline_mode<synchronous>, transform_indices = @transform_2, window_bounds = array<i64: 12, 128, 128>}, {pipeline_mode = #tpu.pipeline_mode<synchronous>, transform_indices = @transform_3, window_bounds = array<i64: 128, 256>}, {pipeline_mode = #tpu.pipeline_mode<synchronous>, transform_indices = @transform_4, window_bounds = array<i64: 12, 1, 128>}, {pipeline_mode = #tpu.pipeline_mode<synchronous>, transform_indices = @transform_5, window_bounds = array<i64: 1, 256>}, {pipeline_mode = #tpu.pipeline_mode<synchronous>, transform_indices = @transform_6, window_bounds = array<i64: 128, 128>}, {pipeline_mode = #tpu.pipeline_mode<synchronous>, transform_indices = @transform_7, window_bounds = array<i64: 1, 128>}, {pipeline_mode = #tpu.pipeline_mode<synchronous>, transform_indices = @transform_8, window_bounds = array<i64: 1, 1>}, {transform_indices = @transform_9, window_bounds = array<i64: 1, 1, 8>}]} {
    %c0 = arith.constant 0 : index
    %c0_0 = arith.constant 0 : index
    %0 = vector.load %arg1[%c0, %c0_0] : memref<8x128xf32, #tpu.memory_space<vmem>>, vector<8x128xf32>
    %cst = arith.constant 0.000000e+00 : f32
    %1 = vector.broadcast %cst : f32 to vector<8x128xf32>
    %2 = arith.maximumf %0, %1 : vector<8x128xf32>
    %3 = arith.truncf %2 : vector<8x128xf32> to vector<8x128xbf16>
    %c0_1 = arith.constant 0 : index
    %c0_2 = arith.constant 0 : index
    %c0_3 = arith.constant 0 : index
    %4 = vector.load %arg3[%c0_1, %c0_2, %c0_3] : memref<12x128x128xbf16, #tpu.memory_space<vmem>>, vector<1x128x128xbf16>
    %5 = vector.shape_cast %4 : vector<1x128x128xbf16> to vector<128x128xbf16>
    %cst_4 = arith.constant dense<0.000000e+00> : vector<8x128xf32>
    %6 = tpu.matmul %3, %5, %cst_4 {dimension_numbers = #tpu.dot_dimension_numbers<[1], [0], [0], [1], [0, 0, 1, 1], [], []>} : vector<8x128xbf16>, vector<128x128xbf16>, vector<8x128xf32> -> vector<8x128xf32>
    %c0_5 = arith.constant 0 : index
    %c0_6 = arith.constant 0 : index
    %c0_7 = arith.constant 0 : index
    %7 = vector.load %arg5[%c0_5, %c0_6, %c0_7] : memref<12x1x128xf32, #tpu.memory_space<vmem>>, vector<1x1x128xf32>
    %8 = vector.shape_cast %7 : vector<1x1x128xf32> to vector<1x128xf32>
    %9 = vector.broadcast %8 : vector<1x128xf32> to vector<8x128xf32>
    %10 = arith.addf %6, %9 : vector<8x128xf32>
    %cst_8 = arith.constant 0.000000e+00 : f32
    %11 = vector.broadcast %cst_8 : f32 to vector<8x128xf32>
    %12 = arith.maximumf %10, %11 : vector<8x128xf32>
    %13 = arith.truncf %12 : vector<8x128xf32> to vector<8x128xbf16>
    %c1 = arith.constant 1 : index
    %c0_9 = arith.constant 0 : index
    %c0_10 = arith.constant 0 : index
    %14 = vector.load %arg3[%c1, %c0_9, %c0_10] : memref<12x128x128xbf16, #tpu.memory_space<vmem>>, vector<1x128x128xbf16>
    %15 = vector.shape_cast %14 : vector<1x128x128xbf16> to vector<128x128xbf16>
    %cst_11 = arith.constant dense<0.000000e+00> : vector<8x128xf32>
    %16 = tpu.matmul %13, %15, %cst_11 {dimension_numbers = #tpu.dot_dimension_numbers<[1], [0], [0], [1], [0, 0, 1, 1], [], []>} : vector<8x128xbf16>, vector<128x128xbf16>, vector<8x128xf32> -> vector<8x128xf32>
    %c1_12 = arith.constant 1 : index
    %c0_13 = arith.constant 0 : index
    %c0_14 = arith.constant 0 : index
    %17 = vector.load %arg5[%c1_12, %c0_13, %c0_14] : memref<12x1x128xf32, #tpu.memory_space<vmem>>, vector<1x1x128xf32>
    %18 = vector.shape_cast %17 : vector<1x1x128xf32> to vector<1x128xf32>
    %19 = vector.broadcast %18 : vector<1x128xf32> to vector<8x128xf32>
    %20 = arith.addf %16, %19 : vector<8x128xf32>
    %21 = arith.addf %0, %20 : vector<8x128xf32>
    %cst_15 = arith.constant 0.000000e+00 : f32
    %22 = vector.broadcast %cst_15 : f32 to vector<8x128xf32>
    %23 = arith.maximumf %21, %22 : vector<8x128xf32>
    %24 = arith.truncf %23 : vector<8x128xf32> to vector<8x128xbf16>
    %c2 = arith.constant 2 : index
    %c0_16 = arith.constant 0 : index
    %c0_17 = arith.constant 0 : index
    %25 = vector.load %arg3[%c2, %c0_16, %c0_17] : memref<12x128x128xbf16, #tpu.memory_space<vmem>>, vector<1x128x128xbf16>
    %26 = vector.shape_cast %25 : vector<1x128x128xbf16> to vector<128x128xbf16>
    %cst_18 = arith.constant dense<0.000000e+00> : vector<8x128xf32>
    %27 = tpu.matmul %24, %26, %cst_18 {dimension_numbers = #tpu.dot_dimension_numbers<[1], [0], [0], [1], [0, 0, 1, 1], [], []>} : vector<8x128xbf16>, vector<128x128xbf16>, vector<8x128xf32> -> vector<8x128xf32>
    %c2_19 = arith.constant 2 : index
    %c0_20 = arith.constant 0 : index
    %c0_21 = arith.constant 0 : index
    %28 = vector.load %arg5[%c2_19, %c0_20, %c0_21] : memref<12x1x128xf32, #tpu.memory_space<vmem>>, vector<1x1x128xf32>
    %29 = vector.shape_cast %28 : vector<1x1x128xf32> to vector<1x128xf32>
    %30 = vector.broadcast %29 : vector<1x128xf32> to vector<8x128xf32>
    %31 = arith.addf %27, %30 : vector<8x128xf32>
    %cst_22 = arith.constant 0.000000e+00 : f32
    %32 = vector.broadcast %cst_22 : f32 to vector<8x128xf32>
    %33 = arith.maximumf %31, %32 : vector<8x128xf32>
    %34 = arith.truncf %33 : vector<8x128xf32> to vector<8x128xbf16>
    %c3 = arith.constant 3 : index
    %c0_23 = arith.constant 0 : index
    %c0_24 = arith.constant 0 : index
    %35 = vector.load %arg3[%c3, %c0_23, %c0_24] : memref<12x128x128xbf16, #tpu.memory_space<vmem>>, vector<1x128x128xbf16>
    %36 = vector.shape_cast %35 : vector<1x128x128xbf16> to vector<128x128xbf16>
    %cst_25 = arith.constant dense<0.000000e+00> : vector<8x128xf32>
    %37 = tpu.matmul %34, %36, %cst_25 {dimension_numbers = #tpu.dot_dimension_numbers<[1], [0], [0], [1], [0, 0, 1, 1], [], []>} : vector<8x128xbf16>, vector<128x128xbf16>, vector<8x128xf32> -> vector<8x128xf32>
    %c3_26 = arith.constant 3 : index
    %c0_27 = arith.constant 0 : index
    %c0_28 = arith.constant 0 : index
    %38 = vector.load %arg5[%c3_26, %c0_27, %c0_28] : memref<12x1x128xf32, #tpu.memory_space<vmem>>, vector<1x1x128xf32>
    %39 = vector.shape_cast %38 : vector<1x1x128xf32> to vector<1x128xf32>
    %40 = vector.broadcast %39 : vector<1x128xf32> to vector<8x128xf32>
    %41 = arith.addf %37, %40 : vector<8x128xf32>
    %42 = arith.addf %21, %41 : vector<8x128xf32>
    %cst_29 = arith.constant 0.000000e+00 : f32
    %43 = vector.broadcast %cst_29 : f32 to vector<8x128xf32>
    %44 = arith.maximumf %42, %43 : vector<8x128xf32>
    %45 = arith.truncf %44 : vector<8x128xf32> to vector<8x128xbf16>
    %c4 = arith.constant 4 : index
    %c0_30 = arith.constant 0 : index
    %c0_31 = arith.constant 0 : index
    %46 = vector.load %arg3[%c4, %c0_30, %c0_31] : memref<12x128x128xbf16, #tpu.memory_space<vmem>>, vector<1x128x128xbf16>
    %47 = vector.shape_cast %46 : vector<1x128x128xbf16> to vector<128x128xbf16>
    %cst_32 = arith.constant dense<0.000000e+00> : vector<8x128xf32>
    %48 = tpu.matmul %45, %47, %cst_32 {dimension_numbers = #tpu.dot_dimension_numbers<[1], [0], [0], [1], [0, 0, 1, 1], [], []>} : vector<8x128xbf16>, vector<128x128xbf16>, vector<8x128xf32> -> vector<8x128xf32>
    %c4_33 = arith.constant 4 : index
    %c0_34 = arith.constant 0 : index
    %c0_35 = arith.constant 0 : index
    %49 = vector.load %arg5[%c4_33, %c0_34, %c0_35] : memref<12x1x128xf32, #tpu.memory_space<vmem>>, vector<1x1x128xf32>
    %50 = vector.shape_cast %49 : vector<1x1x128xf32> to vector<1x128xf32>
    %51 = vector.broadcast %50 : vector<1x128xf32> to vector<8x128xf32>
    %52 = arith.addf %48, %51 : vector<8x128xf32>
    %cst_36 = arith.constant 0.000000e+00 : f32
    %53 = vector.broadcast %cst_36 : f32 to vector<8x128xf32>
    %54 = arith.maximumf %52, %53 : vector<8x128xf32>
    %55 = arith.truncf %54 : vector<8x128xf32> to vector<8x128xbf16>
    %c5 = arith.constant 5 : index
    %c0_37 = arith.constant 0 : index
    %c0_38 = arith.constant 0 : index
    %56 = vector.load %arg3[%c5, %c0_37, %c0_38] : memref<12x128x128xbf16, #tpu.memory_space<vmem>>, vector<1x128x128xbf16>
    %57 = vector.shape_cast %56 : vector<1x128x128xbf16> to vector<128x128xbf16>
    %cst_39 = arith.constant dense<0.000000e+00> : vector<8x128xf32>
    %58 = tpu.matmul %55, %57, %cst_39 {dimension_numbers = #tpu.dot_dimension_numbers<[1], [0], [0], [1], [0, 0, 1, 1], [], []>} : vector<8x128xbf16>, vector<128x128xbf16>, vector<8x128xf32> -> vector<8x128xf32>
    %c5_40 = arith.constant 5 : index
    %c0_41 = arith.constant 0 : index
    %c0_42 = arith.constant 0 : index
    %59 = vector.load %arg5[%c5_40, %c0_41, %c0_42] : memref<12x1x128xf32, #tpu.memory_space<vmem>>, vector<1x1x128xf32>
    %60 = vector.shape_cast %59 : vector<1x1x128xf32> to vector<1x128xf32>
    %61 = vector.broadcast %60 : vector<1x128xf32> to vector<8x128xf32>
    %62 = arith.addf %58, %61 : vector<8x128xf32>
    %63 = arith.addf %42, %62 : vector<8x128xf32>
    %cst_43 = arith.constant 0.000000e+00 : f32
    %64 = vector.broadcast %cst_43 : f32 to vector<8x128xf32>
    %65 = arith.maximumf %63, %64 : vector<8x128xf32>
    %66 = arith.truncf %65 : vector<8x128xf32> to vector<8x128xbf16>
    %c6 = arith.constant 6 : index
    %c0_44 = arith.constant 0 : index
    %c0_45 = arith.constant 0 : index
    %67 = vector.load %arg3[%c6, %c0_44, %c0_45] : memref<12x128x128xbf16, #tpu.memory_space<vmem>>, vector<1x128x128xbf16>
    %68 = vector.shape_cast %67 : vector<1x128x128xbf16> to vector<128x128xbf16>
    %cst_46 = arith.constant dense<0.000000e+00> : vector<8x128xf32>
    %69 = tpu.matmul %66, %68, %cst_46 {dimension_numbers = #tpu.dot_dimension_numbers<[1], [0], [0], [1], [0, 0, 1, 1], [], []>} : vector<8x128xbf16>, vector<128x128xbf16>, vector<8x128xf32> -> vector<8x128xf32>
    %c6_47 = arith.constant 6 : index
    %c0_48 = arith.constant 0 : index
    %c0_49 = arith.constant 0 : index
    %70 = vector.load %arg5[%c6_47, %c0_48, %c0_49] : memref<12x1x128xf32, #tpu.memory_space<vmem>>, vector<1x1x128xf32>
    %71 = vector.shape_cast %70 : vector<1x1x128xf32> to vector<1x128xf32>
    %72 = vector.broadcast %71 : vector<1x128xf32> to vector<8x128xf32>
    %73 = arith.addf %69, %72 : vector<8x128xf32>
    %cst_50 = arith.constant 0.000000e+00 : f32
    %74 = vector.broadcast %cst_50 : f32 to vector<8x128xf32>
    %75 = arith.maximumf %73, %74 : vector<8x128xf32>
    %76 = arith.truncf %75 : vector<8x128xf32> to vector<8x128xbf16>
    %c7 = arith.constant 7 : index
    %c0_51 = arith.constant 0 : index
    %c0_52 = arith.constant 0 : index
    %77 = vector.load %arg3[%c7, %c0_51, %c0_52] : memref<12x128x128xbf16, #tpu.memory_space<vmem>>, vector<1x128x128xbf16>
    %78 = vector.shape_cast %77 : vector<1x128x128xbf16> to vector<128x128xbf16>
    %cst_53 = arith.constant dense<0.000000e+00> : vector<8x128xf32>
    %79 = tpu.matmul %76, %78, %cst_53 {dimension_numbers = #tpu.dot_dimension_numbers<[1], [0], [0], [1], [0, 0, 1, 1], [], []>} : vector<8x128xbf16>, vector<128x128xbf16>, vector<8x128xf32> -> vector<8x128xf32>
    %c7_54 = arith.constant 7 : index
    %c0_55 = arith.constant 0 : index
    %c0_56 = arith.constant 0 : index
    %80 = vector.load %arg5[%c7_54, %c0_55, %c0_56] : memref<12x1x128xf32, #tpu.memory_space<vmem>>, vector<1x1x128xf32>
    %81 = vector.shape_cast %80 : vector<1x1x128xf32> to vector<1x128xf32>
    %82 = vector.broadcast %81 : vector<1x128xf32> to vector<8x128xf32>
    %83 = arith.addf %79, %82 : vector<8x128xf32>
    %84 = arith.addf %63, %83 : vector<8x128xf32>
    %cst_57 = arith.constant 0.000000e+00 : f32
    %85 = vector.broadcast %cst_57 : f32 to vector<8x128xf32>
    %86 = arith.maximumf %84, %85 : vector<8x128xf32>
    %87 = arith.truncf %86 : vector<8x128xf32> to vector<8x128xbf16>
    %c8 = arith.constant 8 : index
    %c0_58 = arith.constant 0 : index
    %c0_59 = arith.constant 0 : index
    %88 = vector.load %arg3[%c8, %c0_58, %c0_59] : memref<12x128x128xbf16, #tpu.memory_space<vmem>>, vector<1x128x128xbf16>
    %89 = vector.shape_cast %88 : vector<1x128x128xbf16> to vector<128x128xbf16>
    %cst_60 = arith.constant dense<0.000000e+00> : vector<8x128xf32>
    %90 = tpu.matmul %87, %89, %cst_60 {dimension_numbers = #tpu.dot_dimension_numbers<[1], [0], [0], [1], [0, 0, 1, 1], [], []>} : vector<8x128xbf16>, vector<128x128xbf16>, vector<8x128xf32> -> vector<8x128xf32>
    %c8_61 = arith.constant 8 : index
    %c0_62 = arith.constant 0 : index
    %c0_63 = arith.constant 0 : index
    %91 = vector.load %arg5[%c8_61, %c0_62, %c0_63] : memref<12x1x128xf32, #tpu.memory_space<vmem>>, vector<1x1x128xf32>
    %92 = vector.shape_cast %91 : vector<1x1x128xf32> to vector<1x128xf32>
    %93 = vector.broadcast %92 : vector<1x128xf32> to vector<8x128xf32>
    %94 = arith.addf %90, %93 : vector<8x128xf32>
    %cst_64 = arith.constant 0.000000e+00 : f32
    %95 = vector.broadcast %cst_64 : f32 to vector<8x128xf32>
    %96 = arith.maximumf %94, %95 : vector<8x128xf32>
    %97 = arith.truncf %96 : vector<8x128xf32> to vector<8x128xbf16>
    %c9 = arith.constant 9 : index
    %c0_65 = arith.constant 0 : index
    %c0_66 = arith.constant 0 : index
    %98 = vector.load %arg3[%c9, %c0_65, %c0_66] : memref<12x128x128xbf16, #tpu.memory_space<vmem>>, vector<1x128x128xbf16>
    %99 = vector.shape_cast %98 : vector<1x128x128xbf16> to vector<128x128xbf16>
    %cst_67 = arith.constant dense<0.000000e+00> : vector<8x128xf32>
    %100 = tpu.matmul %97, %99, %cst_67 {dimension_numbers = #tpu.dot_dimension_numbers<[1], [0], [0], [1], [0, 0, 1, 1], [], []>} : vector<8x128xbf16>, vector<128x128xbf16>, vector<8x128xf32> -> vector<8x128xf32>
    %c9_68 = arith.constant 9 : index
    %c0_69 = arith.constant 0 : index
    %c0_70 = arith.constant 0 : index
    %101 = vector.load %arg5[%c9_68, %c0_69, %c0_70] : memref<12x1x128xf32, #tpu.memory_space<vmem>>, vector<1x1x128xf32>
    %102 = vector.shape_cast %101 : vector<1x1x128xf32> to vector<1x128xf32>
    %103 = vector.broadcast %102 : vector<1x128xf32> to vector<8x128xf32>
    %104 = arith.addf %100, %103 : vector<8x128xf32>
    %105 = arith.addf %84, %104 : vector<8x128xf32>
    %c0_71 = arith.constant 0 : index
    %c0_72 = arith.constant 0 : index
    %106 = vector.load %arg2[%c0_71, %c0_72] : memref<8x128xbf16, #tpu.memory_space<vmem>>, vector<8x128xbf16>
    %c0_73 = arith.constant 0 : index
    %c0_74 = arith.constant 0 : index
    %107 = vector.load %arg4[%c0_73, %c0_74] : memref<128x256xbf16, #tpu.memory_space<vmem>>, vector<128x256xbf16>
    %cst_75 = arith.constant dense<0.000000e+00> : vector<8x256xf32>
    %108 = tpu.matmul %106, %107, %cst_75 {dimension_numbers = #tpu.dot_dimension_numbers<[1], [0], [0], [1], [0, 0, 1, 1], [], []>} : vector<8x128xbf16>, vector<128x256xbf16>, vector<8x256xf32> -> vector<8x256xf32>
    %c0_76 = arith.constant 0 : index
    %c0_77 = arith.constant 0 : index
    %109 = vector.load %arg6[%c0_76, %c0_77] : memref<1x256xf32, #tpu.memory_space<vmem>>, vector<1x256xf32>
    %110 = vector.broadcast %109 : vector<1x256xf32> to vector<8x256xf32>
    %111 = arith.addf %108, %110 : vector<8x256xf32>
    %c0_78 = arith.constant 0 : index
    %c0_79 = arith.constant 0 : index
    %112 = vector.load %arg11[%c0_78, %c0_79] : memref<8x256xf32, #tpu.memory_space<vmem>>, vector<8x256xf32>
    tpu.vector_store %arg11[%c0_78, %c0_79], %111 {strides = array<i32>} : memref<8x256xf32, #tpu.memory_space<vmem>>, vector<8x256xf32>,
    %113 = arith.truncf %105 : vector<8x128xf32> to vector<8x128xbf16>
    %c10 = arith.constant 10 : index
    %c0_80 = arith.constant 0 : index
    %c0_81 = arith.constant 0 : index
    %114 = vector.load %arg3[%c10, %c0_80, %c0_81] : memref<12x128x128xbf16, #tpu.memory_space<vmem>>, vector<1x128x128xbf16>
    %115 = vector.shape_cast %114 : vector<1x128x128xbf16> to vector<128x128xbf16>
    %cst_82 = arith.constant dense<0.000000e+00> : vector<8x128xf32>
    %116 = tpu.matmul %113, %115, %cst_82 {dimension_numbers = #tpu.dot_dimension_numbers<[1], [0], [0], [1], [0, 0, 1, 1], [], []>} : vector<8x128xbf16>, vector<128x128xbf16>, vector<8x128xf32> -> vector<8x128xf32>
    %c10_83 = arith.constant 10 : index
    %c0_84 = arith.constant 0 : index
    %c0_85 = arith.constant 0 : index
    %117 = vector.load %arg5[%c10_83, %c0_84, %c0_85] : memref<12x1x128xf32, #tpu.memory_space<vmem>>, vector<1x1x128xf32>
    %118 = vector.shape_cast %117 : vector<1x1x128xf32> to vector<1x128xf32>
    %119 = vector.broadcast %118 : vector<1x128xf32> to vector<8x128xf32>
    %120 = arith.addf %116, %119 : vector<8x128xf32>
    %c0_86 = arith.constant 0 : index
    %c0_87 = arith.constant 0 : index
    %121 = vector.load %arg12[%c0_86, %c0_87] : memref<8x128xf32, #tpu.memory_space<vmem>>, vector<8x128xf32>
    tpu.vector_store %arg12[%c0_86, %c0_87], %120 {strides = array<i32>} : memref<8x128xf32, #tpu.memory_space<vmem>>, vector<8x128xf32>,
    %c0_i32 = arith.constant 0 : i32
    %c1_i32 = arith.constant 1 : i32
    %122 = arith.muli %c0_i32, %c1_i32 : i32
    %c0_i32_88 = arith.constant 0 : i32
    %123 = arith.addi %c0_i32_88, %122 : i32
    %c8_i32 = arith.constant 8 : i32
    %124 = arith.muli %123, %c8_i32 : i32
    %125 = tpu.assume_multiple %124, 8 : i32
    %126 = arith.index_cast %125 : i32 to index
    %c0_89 = arith.constant 0 : index
    %127 = vector.load %arg11[%126, %c0_89] : memref<8x256xf32, #tpu.memory_space<vmem>>, vector<8x256xf32>
    %128 = vector.extract_strided_slice %127 {offsets = [0, 0], sizes = [8, 128], strides = [1, 1]} : vector<8x256xf32> to vector<8x128xf32>
    %129 = arith.truncf %128 : vector<8x128xf32> to vector<8x128xbf16>
    %130 = vector.extract_strided_slice %127 {offsets = [0, 128], sizes = [8, 128], strides = [1, 1]} : vector<8x256xf32> to vector<8x128xf32>
    %131 = arith.index_cast %125 : i32 to index
    %c0_90 = arith.constant 0 : index
    %132 = vector.load %arg12[%131, %c0_90] : memref<8x128xf32, #tpu.memory_space<vmem>>, vector<8x128xf32>
    %c0_91 = arith.constant 0 : index
    %c0_92 = arith.constant 0 : index
    %133 = vector.load %arg7[%c0_91, %c0_92] : memref<128x128xf32, #tpu.memory_space<vmem>>, vector<128x128xf32>
    %134 = tpu.concatenate %130, %130, %130, %130, %130, %130, %130, %130, %130, %130, %130, %130, %130, %130, %130, %130 in 0 : vector<8x128xf32>, vector<8x128xf32>, vector<8x128xf32>, vector<8x128xf32>, vector<8x128xf32>, vector<8x128xf32>, vector<8x128xf32>, vector<8x128xf32>, vector<8x128xf32>, vector<8x128xf32>, vector<8x128xf32>, vector<8x128xf32>, vector<8x128xf32>, vector<8x128xf32>, vector<8x128xf32>, vector<8x128xf32> -> vector<128x128xf32>
    %135 = arith.mulf %134, %133 : vector<128x128xf32>
    %136 = arith.truncf %135 : vector<128x128xf32> to vector<128x128xbf16>
    %137 = tpu.concatenate %132, %132, %132, %132, %132, %132, %132, %132, %132, %132, %132, %132, %132, %132, %132, %132 in 0 : vector<8x128xf32>, vector<8x128xf32>, vector<8x128xf32>, vector<8x128xf32>, vector<8x128xf32>, vector<8x128xf32>, vector<8x128xf32>, vector<8x128xf32>, vector<8x128xf32>, vector<8x128xf32>, vector<8x128xf32>, vector<8x128xf32>, vector<8x128xf32>, vector<8x128xf32>, vector<8x128xf32>, vector<8x128xf32> -> vector<128x128xf32>
    %138 = arith.mulf %137, %133 : vector<128x128xf32>
    %139 = arith.truncf %138 : vector<128x128xf32> to vector<128x128xbf16>
    %cst_93 = arith.constant dense<0.000000e+00> : vector<8x128xf32>
    %140 = tpu.matmul %129, %136, %cst_93 {dimension_numbers = #tpu.dot_dimension_numbers<[1], [1], [0], [0], [0, 0, 1, 0], [], []>} : vector<8x128xbf16>, vector<128x128xbf16>, vector<8x128xf32> -> vector<8x128xf32>
    %141 = tpu.iota {dimensions = array<i32: 1>} : vector<8x128xi32>
    %c8_i32_94 = arith.constant 8 : i32
    %c0_i32_95 = arith.constant 0 : i32
    %142 = arith.cmpi eq, %c8_i32_94, %c0_i32_95 : i32
    %c1_i32_96 = arith.constant 1 : i32
    %143 = arith.select %142, %c1_i32_96, %c8_i32_94 : i32
    %144 = vector.broadcast %143 : i32 to vector<8x128xi32>
    %145 = arith.remsi %141, %144 : vector<8x128xi32>
    %c0_i32_97 = arith.constant 0 : i32
    %146 = vector.broadcast %c0_i32_97 : i32 to vector<8x128xi32>
    %147 = arith.cmpi ne, %145, %146 : vector<8x128xi32>
    %c0_i32_98 = arith.constant 0 : i32
    %148 = vector.broadcast %c0_i32_98 : i32 to vector<8x128xi32>
    %149 = arith.cmpi slt, %145, %148 : vector<8x128xi32>
    %c0_i32_99 = arith.constant 0 : i32
    %150 = arith.cmpi slt, %143, %c0_i32_99 : i32
    %151 = vector.broadcast %150 : i1 to vector<8x128xi1>
    %152 = vector.broadcast %151 : vector<8x128xi1> to vector<8x128xi1>
    %153 = arith.xori %149, %152 : vector<8x128xi1>
    %154 = arith.andi %153, %147 : vector<8x128xi1>
    %155 = vector.broadcast %143 : i32 to vector<8x128xi32>
    %156 = arith.addi %145, %155 : vector<8x128xi32>
    %157 = arith.select %154, %156, %145 : vector<8x128xi1>, vector<8x128xi32>
    %c127_i32 = arith.constant 127 : i32
    %158 = tpu.dynamic_rotate %140 by %c127_i32 dim 1 : vector<8x128xf32>, i32 -> vector<8x128xf32>
    %c7_i32 = arith.constant 7 : i32
    %159 = tpu.dynamic_rotate %140 by %c7_i32 dim 1 : vector<8x128xf32>, i32 -> vector<8x128xf32>
    %c1_i32_100 = arith.constant 1 : i32
    %160 = vector.broadcast %c1_i32_100 : i32 to vector<8x128xi32>
    %161 = arith.addi %157, %160 : vector<8x128xi32>
    %c8_i32_101 = arith.constant 8 : i32
    %162 = vector.broadcast %c8_i32_101 : i32 to vector<8x128xi32>
    %163 = arith.cmpi slt, %161, %162 : vector<8x128xi32>
    %164 = arith.select %163, %158, %159 : vector<8x128xi1>, vector<8x128xf32>
    %165 = arith.maximumf %140, %164 : vector<8x128xf32>
    %c126_i32 = arith.constant 126 : i32
    %166 = tpu.dynamic_rotate %165 by %c126_i32 dim 1 : vector<8x128xf32>, i32 -> vector<8x128xf32>
    %c6_i32 = arith.constant 6 : i32
    %167 = tpu.dynamic_rotate %165 by %c6_i32 dim 1 : vector<8x128xf32>, i32 -> vector<8x128xf32>
    %c2_i32 = arith.constant 2 : i32
    %168 = vector.broadcast %c2_i32 : i32 to vector<8x128xi32>
    %169 = arith.addi %157, %168 : vector<8x128xi32>
    %c8_i32_102 = arith.constant 8 : i32
    %170 = vector.broadcast %c8_i32_102 : i32 to vector<8x128xi32>
    %171 = arith.cmpi slt, %169, %170 : vector<8x128xi32>
    %172 = arith.select %171, %166, %167 : vector<8x128xi1>, vector<8x128xf32>
    %173 = arith.maximumf %165, %172 : vector<8x128xf32>
    %c124_i32 = arith.constant 124 : i32
    %174 = tpu.dynamic_rotate %173 by %c124_i32 dim 1 : vector<8x128xf32>, i32 -> vector<8x128xf32>
    %c4_i32 = arith.constant 4 : i32
    %175 = tpu.dynamic_rotate %173 by %c4_i32 dim 1 : vector<8x128xf32>, i32 -> vector<8x128xf32>
    %c4_i32_103 = arith.constant 4 : i32
    %176 = vector.broadcast %c4_i32_103 : i32 to vector<8x128xi32>
    %177 = arith.addi %157, %176 : vector<8x128xi32>
    %c8_i32_104 = arith.constant 8 : i32
    %178 = vector.broadcast %c8_i32_104 : i32 to vector<8x128xi32>
    %179 = arith.cmpi slt, %177, %178 : vector<8x128xi32>
    %180 = arith.select %179, %174, %175 : vector<8x128xi1>, vector<8x128xf32>
    %181 = arith.maximumf %173, %180 : vector<8x128xf32>
    %182 = arith.subf %140, %181 : vector<8x128xf32>
    %183 = math.exp %182 : vector<8x128xf32>
    %c127_i32_105 = arith.constant 127 : i32
    %184 = tpu.dynamic_rotate %183 by %c127_i32_105 dim 1 : vector<8x128xf32>, i32 -> vector<8x128xf32>
    %c7_i32_106 = arith.constant 7 : i32
    %185 = tpu.dynamic_rotate %183 by %c7_i32_106 dim 1 : vector<8x128xf32>, i32 -> vector<8x128xf32>
    %c1_i32_107 = arith.constant 1 : i32
    %186 = vector.broadcast %c1_i32_107 : i32 to vector<8x128xi32>
    %187 = arith.addi %157, %186 : vector<8x128xi32>
    %c8_i32_108 = arith.constant 8 : i32
    %188 = vector.broadcast %c8_i32_108 : i32 to vector<8x128xi32>
    %189 = arith.cmpi slt, %187, %188 : vector<8x128xi32>
    %190 = arith.select %189, %184, %185 : vector<8x128xi1>, vector<8x128xf32>
    %191 = arith.addf %183, %190 : vector<8x128xf32>
    %c126_i32_109 = arith.constant 126 : i32
    %192 = tpu.dynamic_rotate %191 by %c126_i32_109 dim 1 : vector<8x128xf32>, i32 -> vector<8x128xf32>
    %c6_i32_110 = arith.constant 6 : i32
    %193 = tpu.dynamic_rotate %191 by %c6_i32_110 dim 1 : vector<8x128xf32>, i32 -> vector<8x128xf32>
    %c2_i32_111 = arith.constant 2 : i32
    %194 = vector.broadcast %c2_i32_111 : i32 to vector<8x128xi32>
    %195 = arith.addi %157, %194 : vector<8x128xi32>
    %c8_i32_112 = arith.constant 8 : i32
    %196 = vector.broadcast %c8_i32_112 : i32 to vector<8x128xi32>
    %197 = arith.cmpi slt, %195, %196 : vector<8x128xi32>
    %198 = arith.select %197, %192, %193 : vector<8x128xi1>, vector<8x128xf32>
    %199 = arith.addf %191, %198 : vector<8x128xf32>
    %c124_i32_113 = arith.constant 124 : i32
    %200 = tpu.dynamic_rotate %199 by %c124_i32_113 dim 1 : vector<8x128xf32>, i32 -> vector<8x128xf32>
    %c4_i32_114 = arith.constant 4 : i32
    %201 = tpu.dynamic_rotate %199 by %c4_i32_114 dim 1 : vector<8x128xf32>, i32 -> vector<8x128xf32>
    %c4_i32_115 = arith.constant 4 : i32
    %202 = vector.broadcast %c4_i32_115 : i32 to vector<8x128xi32>
    %203 = arith.addi %157, %202 : vector<8x128xi32>
    %c8_i32_116 = arith.constant 8 : i32
    %204 = vector.broadcast %c8_i32_116 : i32 to vector<8x128xi32>
    %205 = arith.cmpi slt, %203, %204 : vector<8x128xi32>
    %206 = arith.select %205, %200, %201 : vector<8x128xi1>, vector<8x128xf32>
    %207 = arith.addf %199, %206 : vector<8x128xf32>
    %208 = tpu.reciprocal %207 {approx = true} : vector<8x128xf32> -> vector<8x128xf32>
    %209 = arith.mulf %183, %208 : vector<8x128xf32>
    %210 = arith.truncf %209 : vector<8x128xf32> to vector<8x128xbf16>
    %cst_117 = arith.constant dense<0.000000e+00> : vector<8x128xf32>
    %211 = tpu.matmul %210, %139, %cst_117 {dimension_numbers = #tpu.dot_dimension_numbers<[1], [0], [0], [1], [0, 0, 1, 1], [], []>} : vector<8x128xbf16>, vector<128x128xbf16>, vector<8x128xf32> -> vector<8x128xf32>
    %212 = arith.index_cast %125 : i32 to index
    %c0_118 = arith.constant 0 : index
    %213 = vector.load %arg13[%212, %c0_118] : memref<8x128xf32, #tpu.memory_space<vmem>>, vector<8x128xf32>
    tpu.vector_store %arg13[%212, %c0_118], %211 {strides = array<i32>} : memref<8x128xf32, #tpu.memory_space<vmem>>, vector<8x128xf32>,
    %c1_i32_119 = arith.constant 1 : i32
    %c0_120 = arith.constant 0 : index
    %c0_121 = arith.constant 0 : index
    %214 = vector.load %arg13[%c0_120, %c0_121] : memref<8x128xf32, #tpu.memory_space<vmem>>, vector<8x128xf32>
    %215 = arith.truncf %214 : vector<8x128xf32> to vector<8x128xbf16>
    %c11 = arith.constant 11 : index
    %c0_122 = arith.constant 0 : index
    %c0_123 = arith.constant 0 : index
    %216 = vector.load %arg3[%c11, %c0_122, %c0_123] : memref<12x128x128xbf16, #tpu.memory_space<vmem>>, vector<1x128x128xbf16>
    %217 = vector.shape_cast %216 : vector<1x128x128xbf16> to vector<128x128xbf16>
    %cst_124 = arith.constant dense<0.000000e+00> : vector<8x128xf32>
    %218 = tpu.matmul %215, %217, %cst_124 {dimension_numbers = #tpu.dot_dimension_numbers<[1], [0], [0], [1], [0, 0, 1, 1], [], []>} : vector<8x128xbf16>, vector<128x128xbf16>, vector<8x128xf32> -> vector<8x128xf32>
    %c11_125 = arith.constant 11 : index
    %c0_126 = arith.constant 0 : index
    %c0_127 = arith.constant 0 : index
    %219 = vector.load %arg5[%c11_125, %c0_126, %c0_127] : memref<12x1x128xf32, #tpu.memory_space<vmem>>, vector<1x1x128xf32>
    %220 = vector.shape_cast %219 : vector<1x1x128xf32> to vector<1x128xf32>
    %221 = vector.broadcast %220 : vector<1x128xf32> to vector<8x128xf32>
    %222 = arith.addf %218, %221 : vector<8x128xf32>
    %cst_128 = arith.constant 0.000000e+00 : f32
    %223 = vector.broadcast %cst_128 : f32 to vector<8x128xf32>
    %224 = arith.maximumf %222, %223 : vector<8x128xf32>
    %c0_129 = arith.constant 0 : index
    %c0_130 = arith.constant 0 : index
    %225 = vector.load %arg8[%c0_129, %c0_130] : memref<1x128xbf16, #tpu.memory_space<vmem>>, vector<1x128xbf16>
    %226 = arith.truncf %224 : vector<8x128xf32> to vector<8x128xbf16>
    %cst_131 = arith.constant dense<0.000000e+00> : vector<1x8xf32>
    %227 = tpu.matmul %225, %226, %cst_131 {dimension_numbers = #tpu.dot_dimension_numbers<[1], [1], [0], [0], [0, 0, 1, 0], [], []>} : vector<1x128xbf16>, vector<8x128xbf16>, vector<1x8xf32> -> vector<1x8xf32>
    %c0_132 = arith.constant 0 : index
    %c0_133 = arith.constant 0 : index
    %228 = vector.load %arg9[%c0_132, %c0_133] : memref<1x1xf32, #tpu.memory_space<vmem>>, vector<1x1xf32>
    %229 = vector.broadcast %228 : vector<1x1xf32> to vector<1x8xf32>
    %230 = arith.addf %227, %229 : vector<1x8xf32>
    %c0_134 = arith.constant 0 : index
    %c0_135 = arith.constant 0 : index
    %c0_136 = arith.constant 0 : index
    %231 = vector.load %arg10[%c0_134, %c0_135, %c0_136] : memref<1x1x8xf32, #tpu.memory_space<vmem>>, vector<1x1x8xf32>
    %232 = vector.shape_cast %231 : vector<1x1x8xf32> to vector<1x8xf32>
    %233 = vector.shape_cast %230 : vector<1x8xf32> to vector<1x1x8xf32>
    tpu.vector_store %arg10[%c0_134, %c0_135, %c0_136], %233 {strides = array<i32>} : memref<1x1x8xf32, #tpu.memory_space<vmem>>, vector<1x1x8xf32>,
    return
  }
  func.func @transform_0(%arg0: i32) -> (i32, i32) {
    %c0_i32 = arith.constant 0 : i32
    %c0_i32_0 = arith.constant 0 : i32
    return %arg0, %c0_i32 : i32, i32
  }
  func.func @transform_1(%arg0: i32) -> (i32, i32) {
    %c0_i32 = arith.constant 0 : i32
    %c0_i32_0 = arith.constant 0 : i32
    return %arg0, %c0_i32 : i32, i32
  }
  func.func @transform_2(%arg0: i32) -> (i32, i32, i32) {
    %c0_i32 = arith.constant 0 : i32
    %c0_i32_0 = arith.constant 0 : i32
    %c0_i32_1 = arith.constant 0 : i32
    %c0_i32_2 = arith.constant 0 : i32
    return %c0_i32, %c0_i32_0, %c0_i32_1 : i32, i32, i32
  }
  func.func @transform_3(%arg0: i32) -> (i32, i32) {
    %c0_i32 = arith.constant 0 : i32
    %c0_i32_0 = arith.constant 0 : i32
    %c0_i32_1 = arith.constant 0 : i32
    return %c0_i32, %c0_i32_0 : i32, i32
  }
  func.func @transform_4(%arg0: i32) -> (i32, i32, i32) {
    %c0_i32 = arith.constant 0 : i32
    %c0_i32_0 = arith.constant 0 : i32
    %c0_i32_1 = arith.constant 0 : i32
    %c0_i32_2 = arith.constant 0 : i32
    return %c0_i32, %c0_i32_0, %c0_i32_1 : i32, i32, i32
  }
  func.func @transform_5(%arg0: i32) -> (i32, i32) {
    %c0_i32 = arith.constant 0 : i32
    %c0_i32_0 = arith.constant 0 : i32
    %c0_i32_1 = arith.constant 0 : i32
    return %c0_i32, %c0_i32_0 : i32, i32
  }
  func.func @transform_6(%arg0: i32) -> (i32, i32) {
    %c0_i32 = arith.constant 0 : i32
    %c0_i32_0 = arith.constant 0 : i32
    %c0_i32_1 = arith.constant 0 : i32
    return %c0_i32, %c0_i32_0 : i32, i32
  }
  func.func @transform_7(%arg0: i32) -> (i32, i32) {
    %c0_i32 = arith.constant 0 : i32
    %c0_i32_0 = arith.constant 0 : i32
    %c0_i32_1 = arith.constant 0 : i32
    return %c0_i32, %c0_i32_0 : i32, i32
  }
  func.func @transform_8(%arg0: i32) -> (i32, i32) {
    %c0_i32 = arith.constant 0 : i32
    %c0_i32_0 = arith.constant 0 : i32
    %c0_i32_1 = arith.constant 0 : i32
    return %c0_i32, %c0_i32_0 : i32, i32
  }
  func.func @transform_9(%arg0: i32) -> (i32, i32, i32) {
    %c0_i32 = arith.constant 0 : i32
    %c0_i32_0 = arith.constant 0 : i32
    %c0_i32_1 = arith.constant 0 : i32
    return %arg0, %c0_i32, %c0_i32_0 : i32, i32, i32
  }
}

</mosaic_0001>

<bundles_post_ra>
// kernel: tpu_custom_call.1
= control target key start
LH: loop header
LB: loop body
LE: loop exit
PB: predicated region body
PF: predicated region fallthrough
CT: control target
= control target key end

     0   :  { %s4050_s0 = inlined_call_operand.hbm [shape: f32[16,128], index: 0, kind: input, shape index: {}]   ;;  %s4051_s1 = inlined_call_operand.hbm [shape: bf16[16,128], index: 1, kind: input, shape index: {}]   ;;  %s4052_s2 = inlined_call_operand.hbm [shape: bf16[12,128,128], index: 2, kind: input, shape index: {}]   ;;  %s4053_s3 = inlined_call_operand.hbm [shape: bf16[128,256], index: 3, kind: input, shape index: {}]   ;;  %s4054_s4 = inlined_call_operand.hbm [shape: f32[12,1,128], index: 4, kind: input, shape index: {}]   ;;  %s4055_s5 = inlined_call_operand.vmem [shape: f32[1,256], index: 5, kind: input, shape index: {}]   ;;  %s4056_s6 = inlined_call_operand.hbm [shape: f32[128,128], index: 6, kind: input, shape index: {}]   ;;  %s4057_s7 = inlined_call_operand.vmem [shape: bf16[1,128], index: 7, kind: input, shape index: {}]   ;;  %s4058_s8 = inlined_call_operand.<no memory space> [shape: f32[1,1], index: 8, kind: input, shape index: {}]   ;;  %s4059_s9 = inlined_call_operand.hbm [shape: f32[2,1,8], index: 9, kind: output, shape index: {}]  }
   0x1   :  { %4064 = sst [smem:[#allocation24_spill]] %s4050_s0  ;;  %v14_v0 = vstv %s4058_s8 }
   0x2   :  { %4065 = sst [smem:[#allocation25_spill]] %s4052_s2  ;;  %15 = vst [vmem:[#allocation5] sm:$0x1] %v14_v0 }
   0x3   :  { %4066 = sst [smem:[#allocation26_spill]] %s4053_s3 }
   0x4   :  { %4067 = sst [smem:[#allocation27_spill]] %s4054_s4 }
   0x5   :  { %16 = vsyncpa [#allocation7], 0 }
   0x6   :  { %18 = vsyncpa [#allocation7 + $0x1], 0 }
   0x7   :  { %19 = vsyncpa [#allocation10], 0 }
   0x8   :  { %21 = vsyncpa [#allocation10 + $0x1], 0 }
   0x9   :  { %22 = vsyncpa [#allocation13], 0 }
   0xa   :  { %23 = vsyncpa [#allocation16], 0 }
   0xb   :  { %24 = vsyncpa [#allocation8], 0 }
   0xc   :  { %26 = vsyncpa [#allocation8 + $0x1], 0  ;;  %s3498_s11 = smov 0   ;;  %s3500_s12 = smov 0  }
   0xd   :  { %s3502_s13 = smov 0   ;;  %s3504_s14 = smov 0  }
   0xe LB: > { %s3423_s8 = smov [#allocation11]   ;;  %s3519_s16 = sadd.s32 4294967295, %s3421_s14   ;;  %s3421_s14 = sphi %s3504_s14, %s4095_s14   ;;  %s3417_s13 = sphi %s3502_s13, %s4094_s13   ;;  %s3413_s12 = sphi %s3500_s12, %s4093_s12   ;;  %s3409_s11 = sphi %s3498_s11, %s4092_s11  }
   0xf   : > { %s274_s15 = sshll.u32 %s3423_s8, 4  ;;  %p2391_p0 = scmp.ge.s32.totalorder %s3421_s14, 1  ;;  %s275_s15 = int_to_ptr.vmem [resolvable:$true] %s274_s15 }
  0x10   : > { %p4060_p1 = scmp.eq.s32.totalorder %s3519_s16, 0  ;;  %p262_p2 = scmp.lt.s32.totalorder %s3421_s14, 3 }
  0x11   : > { %s3424_s18 = smov [#allocation12]   ;;  %s3425_s21 = smov [#allocation14]  }
  0x12   : > { %p3524_p3 = pnand %p2391_p0, %p262_p2  ;;  %s287_s19 = sshll.u32 %s3424_s18, 4  ;;  %s3537_s19 = int_to_ptr.vmem [resolvable:$true] %s287_s19 }
  0x13   : > { %s3539_s22 = sshll.u32 %s3425_s21, 4  ;;  %s3192_s23 = scalar_lea.vmem %s275_s15, 12288  ;;  %s301_s22 = int_to_ptr.vmem [resolvable:$true] %s3539_s22 }
  0x14   : > { %s4068_s17 = scalar_select %p3524_p3, 1, 0 }
  0x15   : > { %p2971_p5 = pneg %p3524_p3  ;;  %p3193_p8 = scmp.ne.s32.totalorder %s275_s15, %s3192_s23 }
  0x16   : > { %p3200_p11 = scmp.lt.s32.totalorder %s275_s15, %s275_s15  ;;  %p3201_p12 = scmp.lt.s32.totalorder %s3192_s23, %s3192_s23 }
  0x17   : > { %p3533_p6 = pnand %p2971_p5, %p4060_p1 }
  0x18   : > { %p3202_p13 = por %p3201_p12, %p3200_p11 }
  0x19   : > { %p3183_p7 = pneg %p3533_p6 }
  0x1b   : > { %p3195_p9 = pnand %p3193_p8, %p3183_p7 }
  0x1d   : > { %p3196_p10 = pneg %p3195_p9 }
  0x1f   : > { %p3203_p0 = pnand %p3202_p13, %p3196_p10 }
  0x21   : > { %3206 = shalt.err (!%p3203_p0)
}
  0x22   : > { %s3426_s24 = smov 64   ;;  %s3427_s25 = smov 4  }
  0x23   : > { %s4070_s2 = sld [smem:[#allocation25_spill]]  ;;  %s3218_s28 = scalar_lea.vmem %s3537_s19, 2048 }
  0x24   : > { %p3219_p2 = scmp.ne.s32.totalorder %s3537_s19, %s3218_s28  ;;  %p3226_p9 = scmp.lt.s32.totalorder %s3537_s19, %s3537_s19 }
  0x25   : > { %p3227_p10 = scmp.lt.s32.totalorder %s3218_s28, %s3218_s28 }
  0x26   : > { %p3221_p5 = pnand %p3219_p2, %p3183_p7 }
  0x27   : > { %p3228_p11 = por %p3227_p10, %p3226_p9 }
  0x28   : > { %p3222_p8 = pneg %p3221_p5 }
  0x29   : > { %2974 = dma.hbm_to_vmem [thread:$0]  (!%p3533_p6), %s4070_s2, 12288, %s275_s15, [#allocation10], %s3426_s24, %s3426_s24, %s3427_s25  }
  0x2a   : > { %p3229_p12 = pnand %p3228_p11, %p3222_p8 }
  0x2c   : > { %3232 = shalt.err (!%p3229_p12)
}
  0x2d   : > { %s3428_s29 = smov 128   ;;  %s3429_s30 = smov 8  }
  0x2e   : > { %s4071_s3 = sld [smem:[#allocation26_spill]]  ;;  %s3244_s15 = scalar_lea.vmem %s301_s22, 192 }
  0x2f   : > { %p3245_p13 = scmp.ne.s32.totalorder %s301_s22, %s3244_s15  ;;  %p3252_p5 = scmp.lt.s32.totalorder %s301_s22, %s301_s22 }
  0x30   : > { %p3253_p8 = scmp.lt.s32.totalorder %s3244_s15, %s3244_s15 }
  0x31   : > { %p3247_p0 = pnand %p3245_p13, %p3183_p7 }
  0x32   : > { %p3254_p9 = por %p3253_p8, %p3252_p5 }
  0x33   : > { %p3248_p2 = pneg %p3247_p0 }
  0x34   : > { %2977 = dma.hbm_to_vmem [thread:$0]  (!%p3533_p6), %s4071_s3, 2048, %s3537_s19, [#allocation13], %s3428_s29, %s3428_s29, %s3429_s30  }
  0x35   : > { %p3255_p10 = pnand %p3254_p9, %p3248_p2 }
  0x37   : > { %3258 = shalt.err (!%p3255_p10)
}
  0x38   : > { %s3430_s18 = smov 16   ;;  %s3431_s21 = smov 1  }
  0x39   : > { %s4072_s4 = sld [smem:[#allocation27_spill]]  ;;  %s3432_s19 = smov [#allocation15]  }
  0x3a   : > { %s316_s25 = sshll.u32 %s3432_s19, 4  ;;  %s317_s25 = int_to_ptr.vmem [resolvable:$true] %s316_s25 }
  0x3b   : > { %s3270_s26 = scalar_lea.vmem %s317_s25, 2048  ;;  %p3278_p0 = scmp.lt.s32.totalorder %s317_s25, %s317_s25 }
  0x3c   : > { %p3271_p11 = scmp.ne.s32.totalorder %s317_s25, %s3270_s26  ;;  %p3279_p2 = scmp.lt.s32.totalorder %s3270_s26, %s3270_s26 }
  0x3e   : > { %p3273_p12 = pnand %p3271_p11, %p3183_p7  ;;  %p3280_p5 = por %p3279_p2, %p3278_p0 }
  0x3f   : > { %2980 = dma.hbm_to_vmem [thread:$0]  (!%p3533_p6), %s4072_s4, 192, %s301_s22, [#allocation13], %s3430_s18, %s3430_s18, %s3431_s21  }
  0x40   : > { %p3274_p13 = pneg %p3273_p12 }
  0x42   : > { %p3281_p8 = pnand %p3280_p5, %p3274_p13 }
  0x44   : > { %3284 = shalt.err (!%p3281_p8)
}
  0x45   : > { %2983 = dma.hbm_to_vmem [thread:$0]  (!%p3533_p6), %s4056_s6, 2048, %s317_s25, [#allocation16], %s3428_s29, %s3428_s29, %s3429_s30  }
  0x46   : > { %s2390_s20 = sadd.s32 4294967294, %s3421_s14   ;;  %s3589_s28 = sadd.s32 1, %s3421_s14  }
  0x47   : > { %s36_s10 = ssub.s32 %s3421_s14, %s3589_s28  ;;  %s39_s8 = sadd.s32 1, %s3417_s13 }
  0x48   : > { %p37_p7 = scmp.eq.s32.totalorder %s36_s10, 0  ;;  %p46_p9 = scmp.ne.s32.totalorder %s3417_s13, %s3413_s12 }
  0x49   : > { %p47_p10 = scmp.eq.s32.totalorder %s3421_s14, 0  ;;  %p52_p11 = scmp.ne.s32.totalorder %s3413_s12, %s3409_s11 }
  0x4a   : > { %s3600_s15 = scalar_select %p37_p7, %s3417_s13, %s39_s8  }
  0x4b   : > { %p3602_p12 = por %p47_p10, %p46_p9  ;;  %p3608_p6 = por %p4060_p1, %p52_p11 }
  0x4c   : > { %p249_p13 = scmp.eq.s32.totalorder %s3519_s16, 1  ;;  %p255_p0 = scmp.eq.s32.totalorder %s2390_s20, 1 }
  0x4d   : > { %s4074_s29 = scalar_select %p3608_p6, 1, 0 }
  0x4e   : > { %p2999_p2 = scmp.lt.s32.totalorder %s3421_s14, 2  ;;  %s3615_s30 = sand.u32 1, %s3417_s13  }
  0x4f   : > { %p3617_p5 = por %p249_p13, %p46_p9  ;;  %p3621_p8 = por %p255_p0, %p52_p11 }
  0x50   : > { %s2397_s24 = sshll.u32 %s3615_s30, 3  ;;  %s2398_s19 = sshll.u32 %s3421_s14, 7 }
  0x51   : > { %s4075_s21 = scalar_select %p3617_p5, 1, 0 }
  0x52   : > { %s4076_s23 = scalar_select %p3621_p8, 1, 0 }
  0x53   : > { %s4077_s0 = sld [smem:[#allocation24_spill]]  ;;  %s340_s27 = scalar_lea.vmem [#allocation6], %s2397_s24 }
  0x54   : > { %s347_s20 = sshll.u32 %s340_s27, 4  ;;  %p3636_p7 = pnand %p2999_p2, %p3602_p12  ;;  %s3632_s20 = int_to_ptr.vmem [resolvable:$true] %s347_s20 }
  0x55   : > { %s337_s3 = scalar_lea.sflag [#allocation7], %s3615_s30 }
  0x56   : > { %p3287_p10 = pneg %p3636_p7 }
  0x59   : > { %s3630_s22 = scalar_lea.hbm %s4077_s0, %s2398_s19  ;;  %s3290_s18 = scalar_lea.hbm %s4077_s0, 256 }
  0x5a   : > { %s3285_s25 = scalar_lea.hbm %s3630_s22, 128  ;;  %p3291_p12 = scmp.lt.s32.totalorder %s3630_s22, %s4077_s0 }
  0x5b   : > { %p3286_p9 = scmp.ne.s32.totalorder %s3630_s22, %s3285_s25  ;;  %p3292_p0 = scmp.lt.s32.totalorder %s3290_s18, %s3285_s25 }
  0x5d   : > { %p3288_p11 = pnand %p3287_p10, %p3286_p9  ;;  %p3293_p2 = por %p3292_p0, %p3291_p12 }
  0x5f   : > { %p3289_p13 = pneg %p3288_p11 }
  0x61   : > { %p3294_p4 = pnand %p3293_p2, %p3289_p13 }
  0x63   : > { %3297 = shalt.err (!%p3294_p4)
}
  0x64   : > { %s3298_s8 = scalar_lea.vmem %s3632_s20, 128  ;;  %s3433_s24 = smov [#allocation6]  }
  0x65   : > { %p3299_p1 = scmp.ne.s32.totalorder %s3632_s20, %s3298_s8  ;;  %s3303_s19 = sshll.u32 %s3433_s24, 4  ;;  %s3304_s19 = int_to_ptr.vmem [resolvable:$false] %s3303_s19 }
  0x66   : > { %s3305_s2 = scalar_lea.vmem %s3304_s19, 256  ;;  %p3306_p8 = scmp.lt.s32.totalorder %s3632_s20, %s3304_s19 }
  0x67   : > { %p3301_p9 = pnand %p3299_p1, %p3287_p10  ;;  %p3307_p5 = scmp.lt.s32.totalorder %s3305_s2, %s3298_s8 }
  0x69   : > { %p3302_p11 = pneg %p3301_p9  ;;  %p3308_p6 = por %p3307_p5, %p3306_p8 }
  0x6b   : > { %p3309_p12 = pnand %p3308_p6, %p3302_p11 }
  0x6d   : > { %3312 = shalt.err (!%p3309_p12)
}
  0x6e   : > { %2987 = dma.hbm_to_vmem [thread:$0]  (!%p3636_p7), %s3630_s22, 128, %s3632_s20, %s337_s3  }
  0x6f   : > { %s2400_s25 = sshll.u32 %s3421_s14, 6  ;;  %s4079_s24 = sshll.u32 %s3615_s30, 2 }
  0x70   : > { %s3671_s27 = scalar_lea.hbm %s4051_s1, %s2400_s25  ;;  %s358_s2 = scalar_lea.vmem [#allocation9], %s4079_s24 }
  0x71   : > { %s365_s8 = sshll.u32 %s358_s2, 4  ;;  %s4080_s19 = sand.u32 1, %s3421_s14   ;;  %s366_s8 = int_to_ptr.vmem [resolvable:$true] %s365_s8 }
  0x72   : > { %s355_s0 = scalar_lea.sflag [#allocation10], %s4080_s19  ;;  %s3313_s4 = scalar_lea.hbm %s3671_s27, 64 }
  0x73   : > { %p3314_p1 = scmp.ne.s32.totalorder %s3671_s27, %s3313_s4  ;;  %s3318_s20 = scalar_lea.hbm %s4051_s1, 128 }
  0x74   : > { %p3319_p5 = scmp.lt.s32.totalorder %s3671_s27, %s4051_s1  ;;  %p3320_p8 = scmp.lt.s32.totalorder %s3318_s20, %s3313_s4 }
  0x75   : > { %p3316_p4 = pnand %p3314_p1, %p3287_p10 }
  0x76   : > { %p3321_p13 = por %p3320_p8, %p3319_p5 }
  0x77   : > { %p3317_p6 = pneg %p3316_p4 }
  0x79   : > { %p3322_p0 = pnand %p3321_p13, %p3317_p6 }
  0x7b   : > { %3325 = shalt.err (!%p3322_p0)
}
  0x7c   : > { %s3326_s18 = scalar_lea.vmem %s366_s8, 64  ;;  %s3434_s26 = smov [#allocation9]  }
  0x7d   : > { %p3327_p2 = scmp.ne.s32.totalorder %s366_s8, %s3326_s18  ;;  %s3331_s24 = sshll.u32 %s3434_s26, 4  ;;  %s3332_s24 = int_to_ptr.vmem [resolvable:$false] %s3331_s24 }
  0x7e   : > { %s3333_s2 = scalar_lea.vmem %s3332_s24, 128  ;;  %p3334_p12 = scmp.lt.s32.totalorder %s366_s8, %s3332_s24 }
  0x7f   : > { %p3329_p9 = pnand %p3327_p2, %p3287_p10  ;;  %p3335_p1 = scmp.lt.s32.totalorder %s3333_s2, %s3326_s18 }
  0x81   : > { %p3330_p11 = pneg %p3329_p9  ;;  %p3336_p4 = por %p3335_p1, %p3334_p12 }
  0x83   : > { %p3337_p3 = pnand %p3336_p4, %p3330_p11 }
  0x85   : > { %3340 = shalt.err (!%p3337_p3)
}
  0x86   : > { %2990 = dma.hbm_to_vmem [thread:$0]  (!%p3636_p7), %s3671_s27, 64, %s366_s8, %s355_s0  }
  0x87   : > { %p4081_p6 = scmp.ne.s32.totalorder %s4068_s17, 0 }
  0x88   : > { %s3698_s4 = sand.u32 (!%p4081_p6), 1, %s3413_s12   ;;  %p4082_p10 = scmp.ne.s32.totalorder (!%p4081_p6), %s4074_s29, 0 }
  0x89   : > { %374 = sbr.rel (%p4081_p6) target bundleno = 3640 (0xe38), region = 56  ;;  %s2402_s19 = sshll.u32 (!%p4081_p6), %s3698_s4, 3 }
  0x8a   : > { %s377_s3 = scalar_lea.sflag (!%p4081_p6), [#allocation7], %s3698_s4  ;;  %s3702_s22 = scalar_lea.vmem (!%p4081_p6), [#allocation6], %s2402_s19 }
  0x8e   : > { %3384 = dma.done.wait (%p4082_p10), %s377_s3, 128  }
  0x8f   : > { %3386 = vsyncadd (%p4082_p10), %s377_s3, 4294967168  ;;  %s385_s0 = sand.u32 1, %s3519_s16   ;;  %s2403_s17 = sshll.u32 %s3698_s4, 2 }
  0x90   : > { %s386_s10 = scalar_lea.sflag [#allocation10], %s385_s0  ;;  %s3710_s27 = scalar_lea.vmem [#allocation9], %s2403_s17 }
  0x91   : > { %3388 = dma.done.wait (%p4082_p10), %s386_s10, 64  }
  0x92   : > { %3390 = vsyncadd (%p4082_p10), %s386_s10, 4294967232  ;;  %p4083_p3 = scmp.eq.s32.totalorder %s3519_s16, 0 }
  0x94   : > { %3392 = dma.done.wait (%p4083_p3), [#allocation10], 12288   ;;  %p4084_p7 = pmov %p4083_p3 }
  0x95   : > { %p4085_p5 = pmov %p4083_p3 }
  0x96   : > { %3394 = vsyncadd (%p4084_p7), [#allocation10], 4294955008 }
  0x97   : > { %3396 = dma.done.wait (%p4085_p5), [#allocation13], 2240   ;;  %p4086_p8 = pmov %p4083_p3 }
  0x98   : > { %p4087_p13 = pmov %p4083_p3 }
  0x99   : > { %3398 = vsyncadd (%p4086_p8), [#allocation13], 4294965056 }
  0x9a   : > { %3400 = dma.done.wait (%p4087_p13), [#allocation16], 2048   ;;  %p4088_p0 = pmov %p4083_p3 }
  0x9b   : > { %v3435_v1 = vmov 0.0   ;;  %vm3436_vm0 = vmmov 0   ;;  %v3057_v2 = vld [vmem:[#allocation11 + $0x38] sm:$0xff]   ;;  %v3058_v3 = vld [vmem:[#allocation11 + $0x30] sm:$0xff]   ;;  %v3059_v4 = vld [vmem:[#allocation11 + $0x28] sm:$0xff]   ;;  %s3438_s20 = smov 127  }
  0x9c   : > { %3402 = vsyncadd (%p4088_p0), [#allocation16], 4294965248  ;;  %2663 = vmatprep.subr.bf16.mxu0 %v3435_v1  ;;  %2679 = vmatprep.mubr.msk.bf16.mxu0 %vm3436_vm0, %v3435_v1  ;;  %v3060_v5 = vld [vmem:[#allocation11 + $0x20] sm:$0xff]   ;;  %v3065_v6 = vld [vmem:[#allocation11 + $0x78] sm:$0xff]   ;;  %s3439_s25 = smov 7   ;;  %s3440_s30 = smov 126  }
  0x9d   : > { %2683 = vmatprep.subr.bf16.mxu1 %v3435_v1  ;;  %2699 = vmatprep.mubr.msk.bf16.mxu1 %vm3436_vm0, %v3435_v1  ;;  %v3737_v7 = vld [vmem:[%s3702_s22] sm:$0xff]  ;;  %v3061_v9 = vld [vmem:[#allocation11 + $0x18] sm:$0xff]   ;;  %v3068_v13 = vld [vmem:[#allocation11 + $0x60] sm:$0xff]   ;;  %s3441_s18 = smov 6   ;;  %s3442_s26 = smov 4   ;;  %vm2248_vm4 = vcmask 57344  }
  0x9e   : > { %2664 = vmatpush3.bf16.msra.mxu0 %v3057_v2  ;;  %2684 = vmatpush3.bf16.msra.mxu1 %v3065_v6  ;;  %v3066_v8 = vld [vmem:[#allocation11 + $0x70] sm:$0xff]   ;;  %v446_v10 = vmax.f32 %v3737_v7, 0.0  ;;  %v3067_v11 = vld [vmem:[#allocation11 + $0x68] sm:$0xff]   ;;  %v3069_v15 = vld [vmem:[#allocation11 + $0x58] sm:$0xff]   ;;  %s3443_s24 = smov 124   ;;  %s2532_s3 = sshll.u32 %s3519_s16, 4 }
  0x9f   : > { %2665 = vmatprep.subr.bf16.mxu0 %v3435_v1  ;;  %2685 = vmatprep.subr.bf16.mxu1 %v3435_v1  ;;  %v3062_v12 = vld [vmem:[#allocation11 + $0x10] sm:$0xff]   ;;  %v3063_v14 = vld [vmem:[#allocation11 + $0x8] sm:$0xff]   ;;  %v3064_v16 = vld [vmem:[#allocation11] sm:$0xff]   ;;  %s443_s22 = scalar_lea.vmem [#allocation17], %s3698_s4  ;;  %s2251_s29 = scalar_lea.sflag [#allocation8], %s3698_s4 }
  0xa0   : > { %v3070_v17 = vld [vmem:[#allocation11 + $0x50] sm:$0xff]   ;;  %v447_v18 = vpack.c.bf16 %v446_v10, %v446_v10  ;;  %v3071_v19 = vld [vmem:[#allocation11 + $0x48] sm:$0xff]   ;;  %v3072_v20 = vld [vmem:[#allocation11 + $0x40] sm:$0xff]   ;;  %s2263_s0 = sshll.u32 %s443_s22, 4  ;;  %p4089_p9 = scmp.ne.s32.totalorder %s4075_s21, 0  ;;  %s4009_s0 = int_to_ptr.vmem [resolvable:$true] %s2263_s0 }
  0xa1   : > { %v3073_v21 = vld [vmem:[#allocation11 + $0xb8] sm:$0xff]   ;;  %v3074_v22 = vld [vmem:[#allocation11 + $0xb0] sm:$0xff]   ;;  %v3075_v23 = vld [vmem:[#allocation11 + $0xa8] sm:$0xff]   ;;  %s3341_s16 = scalar_lea.vmem %s4009_s0, 16  ;;  %s3444_s8 = smov [#allocation17]  }
  0xa2   : > { %2666 = vmatpush3.bf16.msra.mxu0 %v3058_v3  ;;  %2686 = vmatpush3.bf16.msra.mxu1 %v3066_v8  ;;  %v3076_v24 = vld [vmem:[#allocation11 + $0xa0] sm:$0xff]   ;;  %v3077_v25 = vld [vmem:[#allocation11 + $0x98] sm:$0xff]   ;;  %v3078_v26 = vld [vmem:[#allocation11 + $0x90] sm:$0xff]   ;;  %p3342_p2 = scmp.ne.s32.totalorder %s4009_s0, %s3341_s16 }
  0xa3   : > { %2667 = vmatprep.subr.bf16.mxu0 %v3435_v1  ;;  %2687 = vmatprep.subr.bf16.mxu1 %v3435_v1  ;;  %v2408_v27 = vld [vmem:[#allocation14] ss:$0 sm:$0xff]  ;;  %v3079_v35 = vld [vmem:[#allocation11 + $0x88] sm:$0xff]   ;;  %v3081_v37 = vld [vmem:[#allocation11 + $0xf8] sm:$0xff]  }
  0xa4   : > { %v3080_v36 = vld [vmem:[#allocation11 + $0x80] sm:$0xff]   ;;  %v3082_v38 = vld [vmem:[#allocation11 + $0xf0] sm:$0xff]   ;;  %v3083_v39 = vld [vmem:[#allocation11 + $0xe8] sm:$0xff]   ;;  %p3343_p11 = pnand %p3342_p2, %p4089_p9 }
  0xa5   : > { %v3084_v40 = vld [vmem:[#allocation11 + $0xe0] sm:$0xff]   ;;  %v3085_v41 = vld [vmem:[#allocation11 + $0xd8] sm:$0xff]   ;;  %v3086_v42 = vld [vmem:[#allocation11 + $0xd0] sm:$0xff]  }
  0xa6   : > { %2668 = vmatpush3.bf16.msra.mxu0 %v3059_v4  ;;  %2688 = vmatpush3.bf16.msra.mxu1 %v3067_v11  ;;  %v2417_v43 = vld [vmem:[#allocation14 + $0x1] ss:$0 sm:$0xff]  ;;  %v3087_v52 = vld [vmem:[#allocation11 + $0xc8] sm:$0xff]   ;;  %v3089_v54 = vld [vmem:[#allocation11 + $0x138] sm:$0xff]   ;;  %p3344_p12 = pneg %p3343_p11 }
  0xa7   : > { %2669 = vmatprep.subr.bf16.mxu0 %v3435_v1  ;;  %2689 = vmatprep.subr.bf16.mxu1 %v3435_v1  ;;  %v3088_v53 = vld [vmem:[#allocation11 + $0xc0] sm:$0xff]   ;;  %v3090_v55 = vld [vmem:[#allocation11 + $0x130] sm:$0xff]   ;;  %v3091_v56 = vld [vmem:[#allocation11 + $0x128] sm:$0xff]  }
  0xa8   : > { %v3092_v57 = vld [vmem:[#allocation11 + $0x120] sm:$0xff]   ;;  %v3093_v58 = vld [vmem:[#allocation11 + $0x118] sm:$0xff]   ;;  %v3094_v59 = vld [vmem:[#allocation11 + $0x110] sm:$0xff]  }
  0xa9   : > { %v2426_v60 = vld [vmem:[#allocation14 + $0x2] ss:$0 sm:$0xff]  ;;  %v3098_v8 = vld [vmem:[#allocation11 + $0x170] sm:$0xff]   ;;  %v3101_v11 = vld [vmem:[#allocation11 + $0x158] sm:$0xff]  }
  0xaa   : > { %2670 = vmatpush3.bf16.msra.mxu0 %v3060_v5  ;;  %2690 = vmatpush3.bf16.msra.mxu1 %v3068_v13  ;;  %v3095_v5 = vld [vmem:[#allocation11 + $0x108] sm:$0xff]   ;;  %v3096_v6 = vld [vmem:[#allocation11 + $0x100] sm:$0xff]  }
  0xab   : > { %2671 = vmatprep.subr.bf16.mxu0 %v3435_v1  ;;  %2691 = vmatprep.subr.bf16.mxu1 %v3435_v1  ;;  %v3100_v10 = vld [vmem:[#allocation11 + $0x160] sm:$0xff]  }
  0xac   : > { %v2435_v13 = vld [vmem:[#allocation14 + $0x3] ss:$0 sm:$0xff] }
  0xae   : > { %2672 = vmatpush3.bf16.msra.mxu0 %v3061_v9  ;;  %2692 = vmatpush3.bf16.msra.mxu1 %v3069_v15  ;;  %v3099_v9 = vld [vmem:[#allocation11 + $0x168] sm:$0xff]  }
  0xaf   : > { %2673 = vmatprep.subr.bf16.mxu0 %v3435_v1  ;;  %2693 = vmatprep.subr.bf16.mxu1 %v3435_v1 }
  0xb2   : > { %2674 = vmatpush3.bf16.msra.mxu0 %v3062_v12  ;;  %2694 = vmatpush3.bf16.msra.mxu1 %v3070_v17  ;;  %v3102_v12 = vld [vmem:[#allocation11 + $0x150] sm:$0xff]  }
  0xb3   : > { %2675 = vmatprep.subr.bf16.mxu0 %v3435_v1  ;;  %2695 = vmatprep.subr.bf16.mxu1 %v3435_v1 }
  0xb6   : > { %2676 = vmatpush3.bf16.msra.mxu0 %v3063_v14  ;;  %2696 = vmatpush3.bf16.msra.mxu1 %v3071_v19 }
  0xb7   : > { %2677 = vmatprep.subr.bf16.mxu0 %v3435_v1  ;;  %2697 = vmatprep.subr.bf16.mxu1 %v3435_v1 }
  0xba   : > { %2678 = vmatpush3.bf16.msra.mxu0 %v3064_v16  ;;  %2698 = vmatpush3.bf16.msra.mxu1 %v3072_v20 }
  0xbb   : > { %2703 = vmatprep.subr.bf16.mxu0 %v3435_v1  ;;  %2723 = vmatprep.subr.bf16.mxu1 %v3435_v1 }
  0xbd   : > { %2680 = vmatmul.mubr.bf16.vlgmr.msra.gmra.mxu0 %v447_v18 }
  0xbe   : > { %2719 = vmatprep.mubr.msk.bf16.mxu0 %vm3436_vm0, %v3435_v1  ;;  %2704 = vmatpush3.bf16.msra.mxu0 %v3073_v21 }
  0xbf   : > { %2705 = vmatprep.subr.bf16.mxu0 %v3435_v1 }
  0xc2   : > { %2706 = vmatpush3.bf16.msra.mxu0 %v3074_v22  ;;  %v3103_v22 = vld [vmem:[#allocation11 + $0x148] sm:$0xff]  }
  0xc3   : > { %2707 = vmatprep.subr.bf16.mxu0 %v3435_v1 }
  0xc6   : > { %2708 = vmatpush3.bf16.msra.mxu0 %v3075_v23  ;;  %v3104_v23 = vld [vmem:[#allocation11 + $0x140] sm:$0xff]  }
  0xc7   : > { %2709 = vmatprep.subr.bf16.mxu0 %v3435_v1 }
  0xca   : > { %2710 = vmatpush3.bf16.msra.mxu0 %v3076_v24  ;;  %v3105_v24 = vld [vmem:[#allocation11 + $0x1b8] sm:$0xff]  }
  0xcb   : > { %2711 = vmatprep.subr.bf16.mxu0 %v3435_v1 }
  0xce   : > { %2712 = vmatpush3.bf16.msra.mxu0 %v3077_v25  ;;  %v3106_v25 = vld [vmem:[#allocation11 + $0x1b0] sm:$0xff]  }
  0xcf   : > { %2713 = vmatprep.subr.bf16.mxu0 %v3435_v1 }
  0xd2   : > { %2714 = vmatpush3.bf16.msra.mxu0 %v3078_v26  ;;  %v3107_v26 = vld [vmem:[#allocation11 + $0x1a8] sm:$0xff]  }
  0xd3   : > { %2715 = vmatprep.subr.bf16.mxu0 %v3435_v1 }
  0xd6   : > { %2716 = vmatpush3.bf16.msra.mxu0 %v3079_v35 }
  0xd7   : > { %2717 = vmatprep.subr.bf16.mxu0 %v3435_v1 }
  0xda   : > { %2718 = vmatpush3.bf16.msra.mxu0 %v3080_v36 }
  0xdb   : > { %2743 = vmatprep.subr.bf16.mxu0 %v3435_v1 }
 0x17d   : > { %v553_v28 = vpop.f32.mrf.mxu0 }
 0x17e   : > { %v554_v29 = vadd.f32 %v2408_v27, %v553_v28  ;;  %v3108_v27 = vld [vmem:[#allocation11 + $0x1a0] sm:$0xff]   ;;  %v3109_v28 = vld [vmem:[#allocation11 + $0x198] sm:$0xff]  }
 0x17f   : > { %v2681_v30 = vpop.f32.mrf.mxu0 }
 0x180   : > { %v559_v31 = vmax.f32 %v554_v29, 0.0  ;;  %v3110_v29 = vld [vmem:[#allocation11 + $0x190] sm:$0xff]   ;;  %v2444_v30 = vld [vmem:[#allocation14 + $0x4] ss:$0 sm:$0xff] }
 0x181   : > { %v556_v32 = vpop.f32.mrf.mxu0 }
 0x182   : > { %v560_v33 = vpack.c.bf16 %v559_v31, %v559_v31 }
 0x183   : > { %v2682_v34 = vpop.f32.mrf.mxu0 }
 0x184   : > { %2700 = vmatmul.mubr.bf16.vlgmr.msra.gmra.mxu1 %v560_v33 }
 0x185   : > { %2739 = vmatprep.mubr.msk.bf16.mxu1 %vm3436_vm0, %v3435_v1  ;;  %2724 = vmatpush3.bf16.msra.mxu1 %v3081_v37 }
 0x186   : > { %2725 = vmatprep.subr.bf16.mxu1 %v3435_v1 }
 0x189   : > { %2726 = vmatpush3.bf16.msra.mxu1 %v3082_v38  ;;  %v3111_v38 = vld [vmem:[#allocation11 + $0x188] sm:$0xff]  }
 0x18a   : > { %2727 = vmatprep.subr.bf16.mxu1 %v3435_v1 }
 0x18d   : > { %2728 = vmatpush3.bf16.msra.mxu1 %v3083_v39  ;;  %v3112_v39 = vld [vmem:[#allocation11 + $0x180] sm:$0xff]  }
 0x18e   : > { %2729 = vmatprep.subr.bf16.mxu1 %v3435_v1 }
 0x191   : > { %2730 = vmatpush3.bf16.msra.mxu1 %v3084_v40  ;;  %v3113_v40 = vld [vmem:[#allocation11 + $0x1f8] sm:$0xff]  }
 0x192   : > { %2731 = vmatprep.subr.bf16.mxu1 %v3435_v1 }
 0x195   : > { %2732 = vmatpush3.bf16.msra.mxu1 %v3085_v41  ;;  %v3114_v41 = vld [vmem:[#allocation11 + $0x1f0] sm:$0xff]  }
 0x196   : > { %2733 = vmatprep.subr.bf16.mxu1 %v3435_v1 }
 0x199   : > { %2734 = vmatpush3.bf16.msra.mxu1 %v3086_v42  ;;  %v3115_v42 = vld [vmem:[#allocation11 + $0x1e8] sm:$0xff]  }
 0x19a   : > { %2735 = vmatprep.subr.bf16.mxu1 %v3435_v1 }
 0x19d   : > { %2736 = vmatpush3.bf16.msra.mxu1 %v3087_v52 }
 0x19e   : > { %2737 = vmatprep.subr.bf16.mxu1 %v3435_v1 }
 0x1a1   : > { %2738 = vmatpush3.bf16.msra.mxu1 %v3088_v53 }
 0x1a2   : > { %2763 = vmatprep.subr.bf16.mxu1 %v3435_v1 }
 0x244   : > { %v668_v44 = vpop.f32.mrf.mxu1 }
 0x245   : > { %v669_v45 = vadd.f32 %v2417_v43, %v668_v44  ;;  %v3116_v43 = vld [vmem:[#allocation11 + $0x1e0] sm:$0xff]   ;;  %v3117_v44 = vld [vmem:[#allocation11 + $0x1d8] sm:$0xff]  }
 0x246   : > { %v2701_v46 = vpop.f32.mrf.mxu1 }
 0x247   : > { %v3773_v47 = vadd.f32 %v669_v45, %v3737_v7  ;;  %v3097_v7 = vld [vmem:[#allocation11 + $0x178] sm:$0xff]   ;;  %v3118_v45 = vld [vmem:[#allocation11 + $0x1d0] sm:$0xff]   ;;  %v2453_v46 = vld [vmem:[#allocation14 + $0x5] ss:$0 sm:$0xff] }
 0x248   : > { %v671_v48 = vpop.f32.mrf.mxu1 }
 0x249   : > { %v675_v49 = vmax.f32 %v3773_v47, 0.0 }
 0x24a   : > { %v2702_v50 = vpop.f32.mrf.mxu1 }
 0x24b   : > { %v676_v51 = vpack.c.bf16 %v675_v49, %v675_v49 }
 0x24d   : > { %2720 = vmatmul.mubr.bf16.vlgmr.msra.gmra.mxu0 %v676_v51 }
 0x24e   : > { %2759 = vmatprep.mubr.msk.bf16.mxu0 %vm3436_vm0, %v3435_v1  ;;  %2744 = vmatpush3.bf16.msra.mxu0 %v3089_v54 }
 0x24f   : > { %2745 = vmatprep.subr.bf16.mxu0 %v3435_v1 }
 0x252   : > { %2746 = vmatpush3.bf16.msra.mxu0 %v3090_v55  ;;  %v3119_v55 = vld [vmem:[#allocation11 + $0x1c8] sm:$0xff]  }
 0x253   : > { %2747 = vmatprep.subr.bf16.mxu0 %v3435_v1 }
 0x256   : > { %2748 = vmatpush3.bf16.msra.mxu0 %v3091_v56  ;;  %v3120_v56 = vld [vmem:[#allocation11 + $0x1c0] sm:$0xff]  }
 0x257   : > { %2749 = vmatprep.subr.bf16.mxu0 %v3435_v1 }
 0x25a   : > { %2750 = vmatpush3.bf16.msra.mxu0 %v3092_v57  ;;  %v3121_v57 = vld [vmem:[#allocation11 + $0x238] sm:$0xff]  }
 0x25b   : > { %2751 = vmatprep.subr.bf16.mxu0 %v3435_v1 }
 0x25e   : > { %2752 = vmatpush3.bf16.msra.mxu0 %v3093_v58  ;;  %v3122_v58 = vld [vmem:[#allocation11 + $0x230] sm:$0xff]  }
 0x25f   : > { %2753 = vmatprep.subr.bf16.mxu0 %v3435_v1 }
 0x262   : > { %2754 = vmatpush3.bf16.msra.mxu0 %v3094_v59  ;;  %v3123_v59 = vld [vmem:[#allocation11 + $0x228] sm:$0xff]  }
 0x263   : > { %2755 = vmatprep.subr.bf16.mxu0 %v3435_v1 }
 0x266   : > { %2756 = vmatpush3.bf16.msra.mxu0 %v3095_v5 }
 0x267   : > { %2757 = vmatprep.subr.bf16.mxu0 %v3435_v1 }
 0x26a   : > { %2758 = vmatpush3.bf16.msra.mxu0 %v3096_v6 }
 0x26b   : > { %2783 = vmatprep.subr.bf16.mxu0 %v3435_v1 }
 0x30d   : > { %v784_v61 = vpop.f32.mrf.mxu0 }
 0x30e   : > { %v785_v62 = vadd.f32 %v2426_v60, %v784_v61  ;;  %v3124_v60 = vld [vmem:[#allocation11 + $0x220] sm:$0xff]   ;;  %v3125_v61 = vld [vmem:[#allocation11 + $0x218] sm:$0xff]  }
 0x30f   : > { %v2721_v63 = vpop.f32.mrf.mxu0 }
 0x310   : > { %v790_v0 = vmax.f32 %v785_v62, 0.0  ;;  %v3126_v62 = vld [vmem:[#allocation11 + $0x210] sm:$0xff]   ;;  %v2462_v63 = vld [vmem:[#allocation14 + $0x6] ss:$0 sm:$0xff] }
 0x311   : > { %v787_v2 = vpop.f32.mrf.mxu0 }
 0x312   : > { %v791_v3 = vpack.c.bf16 %v790_v0, %v790_v0 }
 0x313   : > { %v2722_v4 = vpop.f32.mrf.mxu0 }
 0x314   : > { %2740 = vmatmul.mubr.bf16.vlgmr.msra.gmra.mxu1 %v791_v3 }
 0x315   : > { %2779 = vmatprep.mubr.msk.bf16.mxu1 %vm3436_vm0, %v3435_v1  ;;  %2764 = vmatpush3.bf16.msra.mxu1 %v3097_v7 }
 0x316   : > { %2765 = vmatprep.subr.bf16.mxu1 %v3435_v1 }
 0x319   : > { %2766 = vmatpush3.bf16.msra.mxu1 %v3098_v8  ;;  %v3127_v8 = vld [vmem:[#allocation11 + $0x208] sm:$0xff]  }
 0x31a   : > { %2767 = vmatprep.subr.bf16.mxu1 %v3435_v1 }
 0x31d   : > { %2768 = vmatpush3.bf16.msra.mxu1 %v3099_v9  ;;  %v3128_v9 = vld [vmem:[#allocation11 + $0x200] sm:$0xff]  }
 0x31e   : > { %2769 = vmatprep.subr.bf16.mxu1 %v3435_v1 }
 0x321   : > { %2770 = vmatpush3.bf16.msra.mxu1 %v3100_v10  ;;  %v3131_v10 = vld [vmem:[#allocation12 + $0x74] ss:$8 sps:$4 sm:$0xff]  }
 0x322   : > { %2771 = vmatprep.subr.bf16.mxu1 %v3435_v1 }
 0x325   : > { %2772 = vmatpush3.bf16.msra.mxu1 %v3101_v11  ;;  %v3437_v11 = vmov 0  }
 0x326   : > { %2773 = vmatprep.subr.bf16.mxu1 %v3435_v1  ;;  %3056 = vset.pattern.permute.xlu0 %v3437_v11 }
 0x329   : > { %2774 = vmatpush3.bf16.msra.mxu1 %v3102_v12  ;;  %v3153_v12 = vld [vmem:[#allocation11 + $0x278] sm:$0xff]  }
 0x32a   : > { %2775 = vmatprep.subr.bf16.mxu1 %v3435_v1 }
 0x32d   : > { %2776 = vmatpush3.bf16.msra.mxu1 %v3103_v22 }
 0x32e   : > { %2777 = vmatprep.subr.bf16.mxu1 %v3435_v1 }
 0x331   : > { %2778 = vmatpush3.bf16.msra.mxu1 %v3104_v23 }
 0x332   : > { %2803 = vmatprep.subr.bf16.mxu1 %v3435_v1 }
 0x3d4   : > { %v899_v14 = vpop.f32.mrf.mxu1 }
 0x3d5   : > { %v900_v15 = vadd.f32 %v2435_v13, %v899_v14  ;;  %v3154_v13 = vld [vmem:[#allocation11 + $0x270] sm:$0xff]   ;;  %v3155_v14 = vld [vmem:[#allocation11 + $0x268] sm:$0xff]  }
 0x3d6   : > { %v2741_v16 = vpop.f32.mrf.mxu1 }
 0x3d7   : > { %v3797_v17 = vadd.f32 %v900_v15, %v3773_v47  ;;  %v3156_v15 = vld [vmem:[#allocation11 + $0x260] sm:$0xff]   ;;  %v3157_v16 = vld [vmem:[#allocation11 + $0x258] sm:$0xff]  }
 0x3d8   : > { %v902_v18 = vpop.f32.mrf.mxu1 }
 0x3d9   : > { %v906_v19 = vmax.f32 %v3797_v17, 0.0  ;;  %v2471_v18 = vld [vmem:[#allocation14 + $0x7] ss:$0 sm:$0xff] }
 0x3da   : > { %v2742_v20 = vpop.f32.mrf.mxu1 }
 0x3db   : > { %v907_v21 = vpack.c.bf16 %v906_v19, %v906_v19 }
 0x3dd   : > { %2760 = vmatmul.mubr.bf16.vlgmr.msra.gmra.mxu0 %v907_v21 }
 0x3de   : > { %2799 = vmatprep.mubr.msk.bf16.mxu0 %vm3436_vm0, %v3435_v1  ;;  %2784 = vmatpush3.bf16.msra.mxu0 %v3105_v24 }
 0x3df   : > { %2785 = vmatprep.subr.bf16.mxu0 %v3435_v1 }
 0x3e2   : > { %2786 = vmatpush3.bf16.msra.mxu0 %v3106_v25 }
 0x3e3   : > { %2787 = vmatprep.subr.bf16.mxu0 %v3435_v1 }
 0x3e6   : > { %2788 = vmatpush3.bf16.msra.mxu0 %v3107_v26  ;;  %v3129_v26 = vld [vmem:[#allocation12 + $0x70] ss:$8 sps:$4 sm:$0xff]  }
 0x3e7   : > { %2789 = vmatprep.subr.bf16.mxu0 %v3435_v1 }
 0x3ea   : > { %2790 = vmatpush3.bf16.msra.mxu0 %v3108_v27 }
 0x3eb   : > { %2791 = vmatprep.subr.bf16.mxu0 %v3435_v1 }
 0x3ee   : > { %2792 = vmatpush3.bf16.msra.mxu0 %v3109_v28  ;;  %v3134_v28 = vld [vmem:[#allocation12 + $0x64] ss:$8 sps:$4 sm:$0xff]  }
 0x3ef   : > { %2793 = vmatprep.subr.bf16.mxu0 %v3435_v1 }
 0x3f2   : > { %2794 = vmatpush3.bf16.msra.mxu0 %v3110_v29  ;;  %v3132_v29 = vld [vmem:[#allocation12 + $0x60] ss:$8 sps:$4 sm:$0xff]  }
 0x3f3   : > { %2795 = vmatprep.subr.bf16.mxu0 %v3435_v1 }
 0x3f6   : > { %2796 = vmatpush3.bf16.msra.mxu0 %v3111_v38  ;;  %v3149_v38 = vld [vmem:[#allocation12 + $0x14] ss:$8 sps:$4 sm:$0xff]  }
 0x3f7   : > { %2797 = vmatprep.subr.bf16.mxu0 %v3435_v1 }
 0x3fa   : > { %2798 = vmatpush3.bf16.msra.mxu0 %v3112_v39  ;;  %v3147_v39 = vld [vmem:[#allocation12 + $0x10] ss:$8 sps:$4 sm:$0xff]  }
 0x3fb   : > { %2823 = vmatprep.subr.bf16.mxu0 %v3435_v1 }
 0x49d   : > { %v1015_v31 = vpop.f32.mrf.mxu0 }
 0x49e   : > { %v1016_v32 = vadd.f32 %v2444_v30, %v1015_v31  ;;  %v3137_v30 = vld [vmem:[#allocation12 + $0x54] ss:$8 sps:$4 sm:$0xff]   ;;  %v3135_v31 = vld [vmem:[#allocation12 + $0x50] ss:$8 sps:$4 sm:$0xff]  }
 0x49f   : > { %v2761_v33 = vpop.f32.mrf.mxu0 }
 0x4a0   : > { %v1021_v34 = vmax.f32 %v1016_v32, 0.0  ;;  %v3140_v32 = vld [vmem:[#allocation12 + $0x44] ss:$8 sps:$4 sm:$0xff]   ;;  %v3138_v33 = vld [vmem:[#allocation12 + $0x40] ss:$8 sps:$4 sm:$0xff]  }
 0x4a1   : > { %v1018_v35 = vpop.f32.mrf.mxu0 }
 0x4a2   : > { %v1022_v36 = vpack.c.bf16 %v1021_v34, %v1021_v34  ;;  %v3143_v34 = vld [vmem:[#allocation12 + $0x34] ss:$8 sps:$4 sm:$0xff]   ;;  %v3141_v35 = vld [vmem:[#allocation12 + $0x30] ss:$8 sps:$4 sm:$0xff]  }
 0x4a3   : > { %v2762_v37 = vpop.f32.mrf.mxu0 }
 0x4a4   : > { %2780 = vmatmul.mubr.bf16.vlgmr.msra.gmra.mxu1 %v1022_v36  ;;  %v3146_v36 = vld [vmem:[#allocation12 + $0x24] ss:$8 sps:$4 sm:$0xff]   ;;  %v3144_v37 = vld [vmem:[#allocation12 + $0x20] ss:$8 sps:$4 sm:$0xff]  }
 0x4a5   : > { %2819 = vmatprep.mubr.msk.bf16.mxu1 %vm3436_vm0, %v3435_v1  ;;  %2804 = vmatpush3.bf16.msra.mxu1 %v3113_v40  ;;  %v3152_v40 = vld [vmem:[#allocation12 + $0x4] ss:$8 sps:$4 sm:$0xff]  }
 0x4a6   : > { %2805 = vmatprep.subr.bf16.mxu1 %v3435_v1 }
 0x4a9   : > { %2806 = vmatpush3.bf16.msra.mxu1 %v3114_v41  ;;  %v3150_v41 = vld [vmem:[#allocation12] ss:$8 sps:$4 sm:$0xff]  }
 0x4aa   : > { %2807 = vmatprep.subr.bf16.mxu1 %v3435_v1 }
 0x4ad   : > { %2808 = vmatpush3.bf16.msra.mxu1 %v3115_v42  ;;  %v1599_v42 = vld [vmem:[%s3710_s27] sm:$0xf]  ;;  %s4007_s27 = scalar_lea.hbm %s4059_s9, %s2532_s3 }
 0x4ae   : > { %2809 = vmatprep.subr.bf16.mxu1 %v3435_v1 }
 0x4b1   : > { %2810 = vmatpush3.bf16.msra.mxu1 %v3116_v43  ;;  %v3159_v43 = vld [vmem:[#allocation11 + $0x248] sm:$0xff]  }
 0x4b2   : > { %2811 = vmatprep.subr.bf16.mxu1 %v3435_v1 }
 0x4b5   : > { %2812 = vmatpush3.bf16.msra.mxu1 %v3117_v44  ;;  %v3160_v44 = vld [vmem:[#allocation11 + $0x240] sm:$0xff]  }
 0x4b6   : > { %2813 = vmatprep.subr.bf16.mxu1 %v3435_v1 }
 0x4b9   : > { %2814 = vmatpush3.bf16.msra.mxu1 %v3118_v45  ;;  %v2480_v45 = vld [vmem:[#allocation14 + $0x8] ss:$0 sm:$0xff] }
 0x4ba   : > { %2815 = vmatprep.subr.bf16.mxu1 %v3435_v1 }
 0x4bd   : > { %2816 = vmatpush3.bf16.msra.mxu1 %v3119_v55  ;;  %v3163_v55 = vld [vmem:[#allocation11 + $0x2a8] sm:$0xff]  }
 0x4be   : > { %2817 = vmatprep.subr.bf16.mxu1 %v3435_v1 }
 0x4c1   : > { %2818 = vmatpush3.bf16.msra.mxu1 %v3120_v56  ;;  %v3164_v56 = vld [vmem:[#allocation11 + $0x2a0] sm:$0xff]  }
 0x4c2   : > { %2843 = vmatprep.subr.bf16.mxu1 %v3435_v1 }
 0x564   : > { %v1130_v47 = vpop.f32.mrf.mxu1 }
 0x565   : > { %v1131_v48 = vadd.f32 %v2453_v46, %v1130_v47 }
 0x566   : > { %v2781_v49 = vpop.f32.mrf.mxu1 }
 0x567   : > { %v3821_v50 = vadd.f32 %v1131_v48, %v3797_v17  ;;  %v3158_v17 = vld [vmem:[#allocation11 + $0x250] sm:$0xff]  }
 0x568   : > { %v1133_v51 = vpop.f32.mrf.mxu1 }
 0x569   : > { %v1137_v52 = vmax.f32 %v3821_v50, 0.0  ;;  %v3161_v51 = vld [vmem:[#allocation11 + $0x2b8] sm:$0xff]  }
 0x56a   : > { %v2782_v53 = vpop.f32.mrf.mxu1 }
 0x56b   : > { %v1138_v54 = vpack.c.bf16 %v1137_v52, %v1137_v52 }
 0x56d   : > { %2800 = vmatmul.mubr.bf16.vlgmr.msra.gmra.mxu0 %v1138_v54  ;;  %v3162_v54 = vld [vmem:[#allocation11 + $0x2b0] sm:$0xff]  }
 0x56e   : > { %2839 = vmatprep.mubr.msk.bf16.mxu0 %vm3436_vm0, %v3435_v1  ;;  %2824 = vmatpush3.bf16.msra.mxu0 %v3121_v57  ;;  %v1618_v57 = vlaneseq }
 0x56f   : > { %2825 = vmatprep.subr.bf16.mxu0 %v3435_v1 }
 0x572   : > { %2826 = vmatpush3.bf16.msra.mxu0 %v3122_v58  ;;  %v3165_v58 = vld [vmem:[#allocation11 + $0x298] sm:$0xff]  }
 0x573   : > { %2827 = vmatprep.subr.bf16.mxu0 %v3435_v1 }
 0x576   : > { %2828 = vmatpush3.bf16.msra.mxu0 %v3123_v59  ;;  %v3859_v59 = vshrl.u32 %v1618_v57, 7 }
 0x577   : > { %2829 = vmatprep.subr.bf16.mxu0 %v3435_v1 }
 0x57a   : > { %2830 = vmatpush3.bf16.msra.mxu0 %v3124_v60  ;;  %v3166_v60 = vld [vmem:[#allocation11 + $0x290] sm:$0xff]  }
 0x57b   : > { %2831 = vmatprep.subr.bf16.mxu0 %v3435_v1 }
 0x57e   : > { %2832 = vmatpush3.bf16.msra.mxu0 %v3125_v61  ;;  %v1620_v61 = vsub.s32 0, %v3859_v59 }
 0x57f   : > { %2833 = vmatprep.subr.bf16.mxu0 %v3435_v1 }
 0x582   : > { %2834 = vmatpush3.bf16.msra.mxu0 %v3126_v62  ;;  %v1616_v62 = vld [vmem:[%s4055_s5] sm:$0x3] }
 0x583   : > { %2835 = vmatprep.subr.bf16.mxu0 %v3435_v1 }
 0x586   : > { %2836 = vmatpush3.bf16.msra.mxu0 %v3127_v8 }
 0x587   : > { %2837 = vmatprep.subr.bf16.mxu0 %v3435_v1 }
 0x58a   : > { %2838 = vmatpush3.bf16.msra.mxu0 %v3128_v9 }
 0x58b   : > { %1708 = vmatprep.subr.bf16.mxu0 %v3131_v10 }
 0x62d   : > { %v1246_v0 = vpop.f32.mrf.mxu0 }
 0x62e   : > { %v1247_v2 = vadd.f32 %v2462_v63, %v1246_v0  ;;  %v1624_v63 = vsub.s32 1, %v3859_v59  ;;  %v1621_v0 = vrot.slane %v1616_v62, %v1620_v61 }
 0x62f   : > { %v2801_v3 = vpop.f32.mrf.mxu0 }
 0x630   : > { %v1252_v4 = vmax.f32 %v1247_v2, 0.0  ;;  %v1625_v2 = vrot.slane %v1616_v62, %v1624_v63 }
 0x631   : > { %v1249_v5 = vpop.f32.mrf.mxu0 }
 0x632   : > { %v1253_v6 = vpack.c.bf16 %v1252_v4, %v1252_v4 }
 0x633   : > { %v2802_v7 = vpop.f32.mrf.mxu0 }
 0x634   : > { %2820 = vmatmul.mubr.bf16.vlgmr.msra.gmra.mxu1 %v1253_v6  ;;  %v3873_v6 = vld [vmem:[#allocation15 + $0x70] sm:$0xff]  ;;  %v3875_v7 = vld [vmem:[#allocation15 + $0x78] sm:$0xff] }
 0x635   : > { %2859 = vmatprep.mubr.msk.bf16.mxu1 %vm3436_vm0, %v3435_v1  ;;  %2844 = vmatpush3.bf16.msra.mxu1 %v3153_v12 }
 0x636   : > { %2845 = vmatprep.subr.bf16.mxu1 %v3435_v1 }
 0x639   : > { %2846 = vmatpush3.bf16.msra.mxu1 %v3154_v13 }
 0x63a   : > { %2847 = vmatprep.subr.bf16.mxu1 %v3435_v1 }
 0x63d   : > { %2848 = vmatpush3.bf16.msra.mxu1 %v3155_v14  ;;  %v3879_v14 = vld [vmem:[#allocation15 + $0x60] sm:$0xff] }
 0x63e   : > { %2849 = vmatprep.subr.bf16.mxu1 %v3435_v1 }
 0x641   : > { %2850 = vmatpush3.bf16.msra.mxu1 %v3156_v15  ;;  %v3881_v15 = vld [vmem:[#allocation15 + $0x68] sm:$0xff] }
 0x642   : > { %2851 = vmatprep.subr.bf16.mxu1 %v3435_v1 }
 0x645   : > { %2852 = vmatpush3.bf16.msra.mxu1 %v3157_v16 }
 0x646   : > { %2853 = vmatprep.subr.bf16.mxu1 %v3435_v1 }
 0x649   : > { %2854 = vmatpush3.bf16.msra.mxu1 %v3158_v17 }
 0x64a   : > { %2855 = vmatprep.subr.bf16.mxu1 %v3435_v1 }
 0x64d   : > { %2856 = vmatpush3.bf16.msra.mxu1 %v3159_v43  ;;  %v3917_v43 = vld [vmem:[#allocation15 + $0x18] sm:$0xff] }
 0x64e   : > { %2857 = vmatprep.subr.bf16.mxu1 %v3435_v1 }
 0x651   : > { %2858 = vmatpush3.bf16.msra.mxu1 %v3160_v44 }
 0x652   : > { %2863 = vmatprep.subr.bf16.mxu1 %v3435_v1 }
 0x6f4   : > { %v1361_v19 = vpop.f32.mrf.mxu1 }
 0x6f5   : > { %v1362_v20 = vadd.f32 %v2471_v18, %v1361_v19  ;;  %v3886_v19 = vld [vmem:[#allocation15 + $0x50] sm:$0xff] }
 0x6f6   : > { %v2821_v21 = vpop.f32.mrf.mxu1 }
 0x6f7   : > { %v3844_v22 = vadd.f32 %v1362_v20, %v3821_v50  ;;  %v3888_v20 = vld [vmem:[#allocation15 + $0x58] sm:$0xff] }
 0x6f8   : > { %v1364_v23 = vpop.f32.mrf.mxu1 }
 0x6f9   : > { %v1368_v24 = vmax.f32 %v3844_v22, 0.0 }
 0x6fa   : > { %v2822_v25 = vpop.f32.mrf.mxu1 }
 0x6fb   : > { %v1369_v27 = vpack.c.bf16 %v1368_v24, %v1368_v24  ;;  %v3893_v25 = vld [vmem:[#allocation15 + $0x40] sm:$0xff] }
 0x6fd   : > { %2840 = vmatmul.mubr.bf16.vlgmr.msra.gmra.mxu0 %v1369_v27 }
 0x6fe   : > { %1709 = vmatpush1.bf16.msra.mxu0 %v3129_v26  ;;  %1740 = vmatprep.mubr.bf16.mxu0 %v3437_v11  ;;  %v3895_v26 = vld [vmem:[#allocation15 + $0x48] sm:$0xff] }
 0x6ff   : > { %1710 = vmatprep.subr.bf16.mxu0 %v3134_v28 }
 0x702   : > { %1711 = vmatpush1.bf16.msra.mxu0 %v3132_v29 }
 0x703   : > { %1712 = vmatprep.subr.bf16.mxu0 %v3137_v30  ;;  %v3900_v30 = vld [vmem:[#allocation15 + $0x30] sm:$0xff] }
 0x706   : > { %1713 = vmatpush1.bf16.msra.mxu0 %v3135_v31  ;;  %v3902_v31 = vld [vmem:[#allocation15 + $0x38] sm:$0xff] }
 0x707   : > { %1714 = vmatprep.subr.bf16.mxu0 %v3140_v32 }
 0x70a   : > { %1715 = vmatpush1.bf16.msra.mxu0 %v3138_v33 }
 0x70b   : > { %1716 = vmatprep.subr.bf16.mxu0 %v3143_v34 }
 0x70e   : > { %1717 = vmatpush1.bf16.msra.mxu0 %v3141_v35  ;;  %v3907_v35 = vld [vmem:[#allocation15 + $0x20] sm:$0xff] }
 0x70f   : > { %1718 = vmatprep.subr.bf16.mxu0 %v3146_v36  ;;  %v3909_v36 = vld [vmem:[#allocation15 + $0x28] sm:$0xff] }
 0x712   : > { %1719 = vmatpush1.bf16.msra.mxu0 %v3144_v37 }
 0x713   : > { %1720 = vmatprep.subr.bf16.mxu0 %v3149_v38 }
 0x716   : > { %1721 = vmatpush1.bf16.msra.mxu0 %v3147_v39  ;;  %v3167_v39 = vld [vmem:[#allocation11 + $0x288] sm:$0xff]  }
 0x717   : > { %1722 = vmatprep.subr.bf16.mxu0 %v3152_v40  ;;  %v3168_v40 = vld [vmem:[#allocation11 + $0x280] sm:$0xff]  }
 0x71a   : > { %1723 = vmatpush1.bf16.msra.mxu0 %v3150_v41 }
 0x71b   : > { %2883 = vmatprep.subr.bf16.mxu0 %v3435_v1 }
 0x71d   : > { %1741 = vmatmul.mubr.bf16.vlgmr.msra.gmra.mxu0 %v1599_v42  ;;  %v3915_v42 = vld [vmem:[#allocation15 + $0x10] sm:$0xff] }
 0x71e   : > { %2899 = vmatprep.mubr.msk.bf16.mxu0 %vm3436_vm0, %v3435_v1 }
 0x7bd   : > { %v1477_v46 = vpop.f32.mrf.mxu0 }
 0x7be   : > { %v1478_v47 = vadd.f32 %v2480_v45, %v1477_v46 }
 0x7bf   : > { %v2841_v48 = vpop.f32.mrf.mxu0 }
 0x7c0   : > { %v1483_v49 = vmax.f32 %v1478_v47, 0.0  ;;  %v3923_v47 = vld [vmem:[#allocation15] sm:$0xff]  ;;  %v3925_v48 = vld [vmem:[#allocation15 + $0x8] sm:$0xff] }
 0x7c1   : > { %v1480_v50 = vpop.f32.mrf.mxu0 }
 0x7c2   : > { %v1484_v52 = vpack.c.bf16 %v1483_v49, %v1483_v49 }
 0x7c3   : > { %v2842_v53 = vpop.f32.mrf.mxu0 }
 0x7c4   : > { %2860 = vmatmul.mubr.bf16.vlgmr.msra.gmra.mxu1 %v1484_v52  ;;  %v2489_v53 = vld [vmem:[#allocation14 + $0x9] ss:$0 sm:$0xff] }
 0x7c5   : > { %2864 = vmatpush3.bf16.msra.mxu1 %v3161_v51  ;;  %2879 = vmatprep.mubr.msk.bf16.mxu1 %vm3436_vm0, %v3435_v1 }
 0x7c6   : > { %2865 = vmatprep.subr.bf16.mxu1 %v3435_v1 }
 0x7c9   : > { %2866 = vmatpush3.bf16.msra.mxu1 %v3162_v54 }
 0x7ca   : > { %2867 = vmatprep.subr.bf16.mxu1 %v3435_v1 }
 0x7cd   : > { %2868 = vmatpush3.bf16.msra.mxu1 %v3163_v55 }
 0x7ce   : > { %2869 = vmatprep.subr.bf16.mxu1 %v3435_v1 }
 0x7d1   : > { %2870 = vmatpush3.bf16.msra.mxu1 %v3164_v56 }
 0x7d2   : > { %2871 = vmatprep.subr.bf16.mxu1 %v3435_v1 }
 0x7d5   : > { %2872 = vmatpush3.bf16.msra.mxu1 %v3165_v58 }
 0x7d6   : > { %2873 = vmatprep.subr.bf16.mxu1 %v3435_v1 }
 0x7d9   : > { %2874 = vmatpush3.bf16.msra.mxu1 %v3166_v60 }
 0x7da   : > { %2875 = vmatprep.subr.bf16.mxu1 %v3435_v1 }
 0x7dd   : > { %v1742_v3 = vpop.f32.mrf.mxu0  ;;  %2876 = vmatpush3.bf16.msra.mxu1 %v3167_v39 }
 0x7de   : > { %v3871_v4 = vadd.f32 %v1742_v3, %v1621_v0  ;;  %2877 = vmatprep.subr.bf16.mxu1 %v3435_v1 }
 0x7df   : > { %v1744_v5 = vpop.f32.mrf.mxu0 }
 0x7e0   : > { %v1745_v8 = vadd.f32 %v1744_v5, %v1625_v2  ;;  %v1871_v52 = vpack.c.bf16 %v3871_v4, %v3871_v4  ;;  %v2514_v4 = vld [vmem:[#allocation14 + $0xa] ss:$0 sm:$0xff] }
 0x7e1   : > { %v1746_v9 = vpop.f32.mrf.mxu0  ;;  %2878 = vmatpush3.bf16.msra.mxu1 %v3168_v40 }
 0x7e2   : > { %v1903_v10 = vmul.f32 %v3873_v6, %v1745_v8  ;;  %v1904_v11 = vmul.f32 %v3875_v7, %v1745_v8  ;;  %v1901_v16 = vmul.f32 %v3879_v14, %v1745_v8  ;;  %v1902_v17 = vmul.f32 %v3881_v15, %v1745_v8  ;;  %2903 = vmatprep.subr.bf16.mxu1 %v3435_v1 }
 0x7e3   : > { %v1747_v12 = vpop.f32.mrf.mxu0  ;;  %v1899_v21 = vmul.f32 %v3886_v19, %v1745_v8  ;;  %v1900_v23 = vmul.f32 %v3888_v20, %v1745_v8  ;;  %v1897_v27 = vmul.f32 %v3893_v25, %v1745_v8  ;;  %v1898_v28 = vmul.f32 %v3895_v26, %v1745_v8 }
 0x7e4   : > { %v1912_v13 = vpack.c.bf16 %v1904_v11, %v1903_v10  ;;  %v1911_v18 = vpack.c.bf16 %v1902_v17, %v1901_v16  ;;  %v1895_v32 = vmul.f32 %v3900_v30, %v1745_v8  ;;  %v1896_v33 = vmul.f32 %v3902_v31, %v1745_v8 }
 0x7e5   : > { %v1910_v24 = vpack.c.bf16 %v1900_v23, %v1899_v21  ;;  %v1909_v29 = vpack.c.bf16 %v1898_v28, %v1897_v27  ;;  %v1893_v37 = vmul.f32 %v3907_v35, %v1745_v8  ;;  %v1894_v38 = vmul.f32 %v3909_v36, %v1745_v8 }
 0x7e6   : > { %2884 = vmatpush3.bf16.xpose.msra.mxu0 %v1912_v13  ;;  %v1908_v34 = vpack.c.bf16 %v1896_v33, %v1895_v32  ;;  %v1891_v44 = vmul.f32 %v3915_v42, %v1745_v8  ;;  %v1892_v45 = vmul.f32 %v3917_v43, %v1745_v8  ;;  %v1889_v49 = vmul.f32 %v3923_v47, %v1745_v8 }
 0x7e7   : > { %2885 = vmatprep.subr.bf16.mxu0 %v3435_v1  ;;  %v1907_v41 = vpack.c.bf16 %v1894_v38, %v1893_v37  ;;  %v1890_v50 = vmul.f32 %v3925_v48, %v1745_v8  ;;  %v1978_v12 = vand.u32 127, %v1618_v57 }
 0x7e8   : > { %v1906_v46 = vpack.c.bf16 %v1892_v45, %v1891_v44 }
 0x7e9   : > { %v1905_v51 = vpack.c.bf16 %v1890_v50, %v1889_v49  ;;  %v1983_v23 = vand.u32 7, %v1978_v12  ;;  %v3171_v12 = vld [vmem:[#allocation11 + $0x2e8] sm:$0xff]  }
 0x7ee   : > { %2886 = vmatpush3.bf16.xpose.msra.mxu0 %v1911_v18 }
 0x7ef   : > { %2887 = vmatprep.subr.bf16.mxu0 %v3435_v1 }
 0x7f6   : > { %2888 = vmatpush3.bf16.xpose.msra.mxu0 %v1910_v24 }
 0x7f7   : > { %2889 = vmatprep.subr.bf16.mxu0 %v3435_v1 }
 0x7fe   : > { %2890 = vmatpush3.bf16.xpose.msra.mxu0 %v1909_v29 }
 0x7ff   : > { %2891 = vmatprep.subr.bf16.mxu0 %v3435_v1 }
 0x806   : > { %2892 = vmatpush3.bf16.xpose.msra.mxu0 %v1908_v34 }
 0x807   : > { %2893 = vmatprep.subr.bf16.mxu0 %v3435_v1 }
 0x80e   : > { %2894 = vmatpush3.bf16.xpose.msra.mxu0 %v1907_v41  ;;  %v2003_v41 = vadd.s32 2, %v1983_v23 }
 0x80f   : > { %2895 = vmatprep.subr.bf16.mxu0 %v3435_v1 }
 0x810   : > { %vm2004_vm2 = vcmp.lt.s32.totalorder %v2003_v41, 8 }
 0x816   : > { %2896 = vmatpush3.bf16.xpose.msra.mxu0 %v1906_v46  ;;  %v2011_v46 = vadd.s32 4, %v1983_v23 }
 0x817   : > { %2897 = vmatprep.subr.bf16.mxu0 %v3435_v1 }
 0x818   : > { %vm2012_vm3 = vcmp.lt.s32.totalorder %v2011_v46, 8 }
 0x81e   : > { %2898 = vmatpush3.bf16.xpose.msra.mxu0 %v1905_v51 }
 0x81f   : > { %2943 = vmatprep.subr.bf16.mxu0 %v3435_v1 }
 0x825   : > { %2900 = vmatmul.mubr.bf16.vlgmr.msra.gmra.mxu0 %v1871_v52 }
 0x826   : > { %2945 = vmatprep.mubr.msk.bf16.mxu0 %vm3436_vm0, %v3435_v1 }
 0x884   : > { %v1592_v54 = vpop.f32.mrf.mxu1 }
 0x885   : > { %v1593_v55 = vadd.f32 %v2489_v53, %v1592_v54 }
 0x886   : > { %v2861_v56 = vpop.f32.mrf.mxu1 }
 0x887   : > { %v1598_v58 = vadd.f32 %v1593_v55, %v3844_v22 }
 0x888   : > { %v1595_v60 = vpop.f32.mrf.mxu1 }
 0x889   : > { %v1751_v62 = vpack.c.bf16 %v1598_v58, %v1598_v58 }
 0x88a   : > { %v2862_v63 = vpop.f32.mrf.mxu1 }
 0x88b   : > { %2880 = vmatmul.mubr.bf16.vlgmr.msra.gmra.mxu1 %v1751_v62 }
 0x88c   : > { %2919 = vmatprep.mubr.msk.bf16.mxu1 %vm3436_vm0, %v3435_v1 }
 0x8e5   : > { %v3938_v0 = vpop.f32.mrf.mxu0 }
 0x8e6   : > { %1991 = vrot.lane.b32.xlu0 %v3938_v0, %s3438_s20 }
 0x8e7   : > { %v2901_v2 = vpop.f32.mrf.mxu0 }
 0x8e9   : > { %v1974_v3 = vpop.f32.mrf.mxu0 }
 0x8ea   : > { %1993 = vrot.lane.b32.xlu0 %v3938_v0, %s3439_s25 }
 0x8eb   : > { %v2902_v22 = vpop.f32.mrf.mxu0 }
 0x94b   : > { %v1859_v5 = vpop.f32.mrf.mxu1 }
 0x94c   : > { %v1860_v8 = vadd.f32 %v2514_v4, %v1859_v5 }
 0x94d   : > { %v2881_v9 = vpop.f32.mrf.mxu1 }
 0x94e   : > { %v1927_v10 = vmul.f32 %v3873_v6, %v1860_v8  ;;  %v1928_v11 = vmul.f32 %v3875_v7, %v1860_v8  ;;  %v1925_v17 = vmul.f32 %v3879_v14, %v1860_v8  ;;  %v1926_v18 = vmul.f32 %v3881_v15, %v1860_v8  ;;  %v3169_v9 = vld [vmem:[#allocation11 + $0x2f8] sm:$0xff]  }
 0x94f   : > { %v1862_v13 = vpop.f32.mrf.mxu1  ;;  %v1923_v27 = vmul.f32 %v3886_v19, %v1860_v8  ;;  %v1924_v6 = vmul.f32 %v3888_v20, %v1860_v8  ;;  %v3952_v7 = vadd.s32 1, %v1983_v23  ;;  %v1921_v14 = vmul.f32 %v3893_v25, %v1860_v8 }
 0x950   : > { %v1936_v16 = vpack.c.bf16 %v1928_v11, %v1927_v10  ;;  %v1935_v24 = vpack.c.bf16 %v1926_v18, %v1925_v17  ;;  %v1922_v15 = vmul.f32 %v3895_v26, %v1860_v8  ;;  %v1919_v20 = vmul.f32 %v3900_v30, %v1860_v8  ;;  %v3170_v11 = vld [vmem:[#allocation11 + $0x2f0] sm:$0xff]   ;;  %v3172_v13 = vld [vmem:[#allocation11 + $0x2e0] sm:$0xff]   ;;  %v3175_v18 = vld [vmem:[#allocation11 + $0x2c8] sm:$0xff]  }
 0x951   : > { %v2882_v21 = vpop.f32.mrf.mxu1  ;;  %v1934_v28 = vpack.c.bf16 %v1924_v6, %v1923_v27  ;;  %vm1996_vm1 = vcmp.lt.s32.totalorder %v3952_v7, 8  ;;  %v1920_v32 = vmul.f32 %v3902_v31, %v1860_v8  ;;  %v1917_v26 = vmul.f32 %v3907_v35, %v1860_v8  ;;  %v3174_v17 = vld [vmem:[#allocation11 + $0x2d0] sm:$0xff]  }
 0x952   : > { %2904 = vmatpush3.bf16.msra.mxu1 %v1936_v16  ;;  %v1933_v19 = vpack.c.bf16 %v1922_v15, %v1921_v14  ;;  %v1918_v37 = vmul.f32 %v3909_v36, %v1860_v8  ;;  %v1915_v31 = vmul.f32 %v3915_v42, %v1860_v8  ;;  %v1916_v38 = vmul.f32 %v3917_v43, %v1860_v8  ;;  %v3173_v16 = vld [vmem:[#allocation11 + $0x2d8] sm:$0xff]   ;;  %v3176_v21 = vld [vmem:[#allocation11 + $0x2c0] sm:$0xff]  }
 0x953   : > { %2905 = vmatprep.subr.bf16.mxu1 %v3435_v1  ;;  %v1932_v25 = vpack.c.bf16 %v1920_v32, %v1919_v20  ;;  %v1913_v40 = vmul.f32 %v3923_v47, %v1860_v8  ;;  %v1914_v35 = vmul.f32 %v3925_v48, %v1860_v8 }
 0x954   : > { %v1931_v30 = vpack.c.bf16 %v1918_v37, %v1917_v26  ;;  %v1930_v39 = vpack.c.bf16 %v1916_v38, %v1915_v31 }
 0x955   : > { %v1929_v36 = vpack.c.bf16 %v1914_v35, %v1913_v40 }
 0x956   : > { %2906 = vmatpush3.bf16.msra.mxu1 %v1935_v24 }
 0x957   : > { %2907 = vmatprep.subr.bf16.mxu1 %v3435_v1 }
 0x958   : > { %v1992_v57 = vpop.permute.xlu0 %1991 }
 0x95a   : > { %2908 = vmatpush3.bf16.msra.mxu1 %v1934_v28  ;;  %v2523_v28 = vld [vmem:[#allocation14 + $0xb] ss:$0 sm:$0xff] }
 0x95b   : > { %2909 = vmatprep.subr.bf16.mxu1 %v3435_v1 }
 0x95c   : > { %v1994_v29 = vpop.permute.xlu0 %1993 }
 0x95d   : > { %v1997_v33 = vsel %vm1996_vm1, %v1992_v57, %v1994_v29  ;;  %v2198_v57 = vld [vmem:[#allocation5] sm:$0x1] }
 0x95e   : > { %v1998_v34 = vmax.f32 %v3938_v0, %v1997_v33  ;;  %2910 = vmatpush3.bf16.msra.mxu1 %v1933_v19  ;;  %v2196_v33 = vld [vmem:[%s4057_s7] sm:$0x1] }
 0x95f   : > { %2911 = vmatprep.subr.bf16.mxu1 %v3435_v1 }
 0x960   : > { %1999 = vrot.lane.b32.xlu1 %v1998_v34, %s3440_s30 }
 0x962   : > { %2912 = vmatpush3.bf16.msra.mxu1 %v1932_v25 }
 0x963   : > { %2913 = vmatprep.subr.bf16.mxu1 %v3435_v1 }
 0x964   : > { %2001 = vrot.lane.b32.xlu1 %v1998_v34, %s3441_s18 }
 0x966   : > { %2914 = vmatpush3.bf16.msra.mxu1 %v1931_v30 }
 0x967   : > { %2915 = vmatprep.subr.bf16.mxu1 %v3435_v1 }
 0x96a   : > { %2916 = vmatpush3.bf16.msra.mxu1 %v1930_v39 }
 0x96b   : > { %2917 = vmatprep.subr.bf16.mxu1 %v3435_v1 }
 0x96e   : > { %2918 = vmatpush3.bf16.msra.mxu1 %v1929_v36 }
 0x96f   : > { %2923 = vmatprep.subr.bf16.mxu1 %v3435_v1 }
 0x9d2   : > { %v2000_v44 = vpop.permute.xlu1 %1999 }
 0x9d6   : > { %v2002_v42 = vpop.permute.xlu1 %2001 }
 0x9d7   : > { %v2005_v43 = vsel %vm2004_vm2, %v2000_v44, %v2002_v42 }
 0x9d8   : > { %v2006_v45 = vmax.f32 %v1998_v34, %v2005_v43 }
 0x9da   : > { %2009 = vrot.lane.b32.xlu1 %v2006_v45, %s3442_s26  ;;  %2007 = vrot.lane.b32.xlu0 %v2006_v45, %s3443_s24 }
 0xa4c   : > { %v2010_v47 = vpop.permute.xlu1 %2009  ;;  %v2008_v48 = vpop.permute.xlu0 %2007 }
 0xa4d   : > { %v2013_v49 = vsel %vm2012_vm3, %v2008_v48, %v2010_v47 }
 0xa4e   : > { %v2014_v50 = vmax.f32 %v2006_v45, %v2013_v49 }
 0xa50   : > { %v2015_v51 = vsub.f32 %v3938_v0, %v2014_v50 }
 0xa52   : > { %v2016_v52 = vmul.f32 1.442695, %v2015_v51 }
 0xa54   : > { %3177 = vpow2.f32 %v2016_v52 }
 0xa61   : > { %v3178_v53 = vpop.eup %3177 }
 0xa62   : > { %2020 = vrot.lane.b32.xlu1 %v3178_v53, %s3439_s25  ;;  %2018 = vrot.lane.b32.xlu0 %v3178_v53, %s3438_s20  ;;  %s3345_s20 = sshll.u32 %s3444_s8, 4  ;;  %s3346_s20 = int_to_ptr.vmem [resolvable:$false] %s3345_s20 }
 0xa63   : > { %s3347_s25 = scalar_lea.vmem %s3346_s20, 32  ;;  %p3348_p1 = scmp.lt.s32.totalorder %s4009_s0, %s3346_s20 }
 0xa64   : > { %p3349_p4 = scmp.lt.s32.totalorder %s3347_s25, %s3341_s16 }
 0xa66   : > { %p3350_p6 = por %p3349_p4, %p3348_p1 }
 0xa68   : > { %p3351_p10 = pnand %p3350_p6, %p3344_p12 }
 0xad4   : > { %v2021_v54 = vpop.permute.xlu1 %2020  ;;  %v2019_v55 = vpop.permute.xlu0 %2018 }
 0xad5   : > { %v2022_v56 = vsel %vm1996_vm1, %v2019_v55, %v2021_v54 }
 0xad6   : > { %v2023_v58 = vadd.f32 %v3178_v53, %v2022_v56 }
 0xad8   : > { %2026 = vrot.lane.b32.xlu1 %v2023_v58, %s3441_s18  ;;  %2024 = vrot.lane.b32.xlu0 %v2023_v58, %s3440_s30 }
 0xb4a   : > { %v2027_v60 = vpop.permute.xlu1 %2026  ;;  %v2025_v62 = vpop.permute.xlu0 %2024 }
 0xb4b   : > { %v2028_v63 = vsel %vm2004_vm2, %v2025_v62, %v2027_v60 }
 0xb4c   : > { %v2029_v0 = vadd.f32 %v2028_v63, %v2023_v58 }
 0xb4e   : > { %2032 = vrot.lane.b32.xlu1 %v2029_v0, %s3442_s26  ;;  %2030 = vrot.lane.b32.xlu0 %v2029_v0, %s3443_s24 }
 0xb52   : > { %2201 = vperm.xlu0 %3056, %v2198_v57  }
 0xbc0   : > { %v2033_v2 = vpop.permute.xlu1 %2032  ;;  %v2031_v3 = vpop.permute.xlu0 %2030 }
 0xbc1   : > { %v2034_v22 = vsel %vm2012_vm3, %v2031_v3, %v2033_v2 }
 0xbc2   : > { %v2035_v4 = vadd.f32 %v2034_v22, %v2029_v0 }
 0xbc4   : > { %3179 = vrcp.f32 %v2035_v4 }
 0xbcd   : > { %v2202_v34 = vpop.permute.xlu0 %2201 }
 0xbce   : > { %v2207_v25 = vrot.slane %v2202_v34, %v1620_v61 }
 0xbd1   : > { %v3180_v5 = vpop.eup %3179 }
 0xbd2   : > { %v2037_v8 = vmul.f32 %v3180_v5, %v3178_v53 }
 0xbd4   : > { %v2038_v10 = vpack.c.bf16 %v2037_v8, %v2037_v8 }
 0xbd6   : > { %2920 = vmatmul.mubr.bf16.vlgmr.msra.gmra.mxu1 %v2038_v10 }
 0xbd7   : > { %2924 = vmatpush3.bf16.msra.mxu1 %v3169_v9  ;;  %2939 = vmatprep.mubr.msk.bf16.mxu1 %vm3436_vm0, %v3435_v1 }
 0xbd8   : > { %2925 = vmatprep.subr.bf16.mxu1 %v3435_v1 }
 0xbdb   : > { %2926 = vmatpush3.bf16.msra.mxu1 %v3170_v11 }
 0xbdc   : > { %2927 = vmatprep.subr.bf16.mxu1 %v3435_v1 }
 0xbdf   : > { %2928 = vmatpush3.bf16.msra.mxu1 %v3171_v12 }
 0xbe0   : > { %2929 = vmatprep.subr.bf16.mxu1 %v3435_v1 }
 0xbe3   : > { %2930 = vmatpush3.bf16.msra.mxu1 %v3172_v13 }
 0xbe4   : > { %2931 = vmatprep.subr.bf16.mxu1 %v3435_v1 }
 0xbe7   : > { %2932 = vmatpush3.bf16.msra.mxu1 %v3173_v16 }
 0xbe8   : > { %2933 = vmatprep.subr.bf16.mxu1 %v3435_v1 }
 0xbeb   : > { %2934 = vmatpush3.bf16.msra.mxu1 %v3174_v17 }
 0xbec   : > { %2935 = vmatprep.subr.bf16.mxu1 %v3435_v1 }
 0xbef   : > { %2936 = vmatpush3.bf16.msra.mxu1 %v3175_v18 }
 0xbf0   : > { %2937 = vmatprep.subr.bf16.mxu1 %v3435_v1 }
 0xbf3   : > { %2938 = vmatpush3.bf16.msra.mxu1 %v3176_v21 }
 0xc96   : > { %v2073_v23 = vpop.f32.mrf.mxu1 }
 0xc97   : > { %v2081_v24 = vpack.c.bf16 %v2073_v23, %v2073_v23 }
 0xc98   : > { %v2921_v27 = vpop.f32.mrf.mxu1 }
 0xc99   : > { %2940 = vmatmul.mubr.bf16.vlgmr.msra.gmra.mxu1 %v2081_v24 }
 0xc9a   : > { %v2076_v6 = vpop.f32.mrf.mxu1 }
 0xc9c   : > { %v2922_v7 = vpop.f32.mrf.mxu1 }
 0xd59   : > { %v2189_v14 = vpop.f32.mrf.mxu1 }
 0xd5a   : > { %v2190_v15 = vadd.f32 %v2523_v28, %v2189_v14 }
 0xd5b   : > { %v2941_v29 = vpop.f32.mrf.mxu1 }
 0xd5c   : > { %v2195_v19 = vmax.f32 %v2190_v15, 0.0 }
 0xd5d   : > { %v2192_v20 = vpop.f32.mrf.mxu1 }
 0xd5e   : > { %v2197_v32 = vpack.c.bf16 %v2195_v19, %v2195_v19 }
 0xd5f   : > { %v2942_v1 = vpop.f32.mrf.mxu1 }
 0xd60   : > { %2944 = vmatpush3.bf16.xpose.msra.mxu0 %v2197_v32 }
 0xd67   : > { %2946 = vmatmul.mubr.bf16.vlgmr.msra.gmra.mxu0 %v2196_v33 }
 0xe27   : > { %v2242_v26 = vpop.f32.mrf.mxu0 }
 0xe28   : > { %v2243_v37 = vadd.f32 %v2242_v26, %v2207_v25 }
 0xe29   : > { %v2947_v30 = vpop.f32.mrf.mxu0 }
 0xe2a   : > { %2249 = vst.msk [vmem:[%s443_s22] sm:$0x1] %vm2248_vm4, %v2243_v37 }
 0xe2b   : > { %v2245_v59 = vpop.f32.mrf.mxu0 }
 0xe2c   : > { %3354 = shalt.err (!%p3351_p10)
}
 0xe2d   : > { %s3355_s30 = scalar_lea.hbm %s4007_s27, 16  ;;  %s3359_s26 = scalar_lea.hbm %s4059_s9, 32 }
 0xe2e   : > { %p3356_p3 = scmp.ne.s32.totalorder %s4007_s27, %s3355_s30  ;;  %p3360_p8 = scmp.lt.s32.totalorder %s4007_s27, %s4059_s9 }
 0xe2f   : > { %p3361_p13 = scmp.lt.s32.totalorder %s3359_s26, %s3355_s30 }
 0xe30   : > { %p3357_p7 = pnand %p3356_p3, %p4089_p9 }
 0xe31   : > { %p3362_p0 = por %p3361_p13, %p3360_p8 }
 0xe32   : > { %p3358_p5 = pneg %p3357_p7 }
 0xe34   : > { %p3363_p2 = pnand %p3362_p0, %p3358_p5 }
 0xe36   : > { %3366 = shalt.err (!%p3363_p2)
}
 0xe37   : > { %2969 = dma.vmem_to_hbm [thread:$0]  (%p4089_p9), %s4009_s0, 16, %s4007_s27, %s2251_s29   ;;  %v2948_v61 = vpop.f32.mrf.mxu0 }
 0xe38 PF: > { %s2275_s19 = sand.u32 1, %s3409_s11   ;;  %p4090_p11 = scmp.ne.s32.totalorder %s4076_s23, 0 }
 0xe39   : > { %p4091_p12 = scmp.ge.s32.totalorder %s3421_s14, 2  ;;  %s2276_s3 = scalar_lea.sflag [#allocation8], %s2275_s19 }
 0xe3b   : > { %p2992_p1 = pnand %p4091_p12, %p4090_p11 }
 0xe3d   : > { %p2993_p4 = pneg %p2992_p1 }
 0xe3f   : > { %3404 = dma.done.wait (%p2993_p4), %s2276_s3, 16  }
 0xe40   : > { %3406 = vsyncadd (%p2993_p4), %s2276_s3, 4294967280  ;;  %p29_p6 = scmp.ge.s32.totalorder %s3589_s28, 4   ;;  %s4092_s11 = smov %s3413_s12 }
 0xe41   : > { %s4093_s12 = smov %s3417_s13  ;;  %s4094_s13 = smov %s3600_s15 }
 0xe42   : > { %s4095_s14 = smov %s3589_s28  ;;  %31 = sbr.rel (!%p29_p6) target bundleno = 14 (0xe), region = 153 }
 0xe47   :  { %2280 = vsyncpa [#allocation7], 1 }
 0xe48   :  { %2282 = vsyncpa [#allocation7 + $0x1], 1 }
 0xe49   :  { %2283 = vsyncpa [#allocation10], 1 }
 0xe4a   :  { %2285 = vsyncpa [#allocation10 + $0x1], 1 }
 0xe4b   :  { %2286 = vsyncpa [#allocation13], 1 }
 0xe4c   :  { %2287 = vsyncpa [#allocation16], 1 }
 0xe4d   :  { %2288 = vsyncpa [#allocation8], 1 }
 0xe4e   :  { %2290 = vsyncpa [#allocation8 + $0x1], 1 }

</bundles_post_ra>
